<compile_context>
chip_gen: v5e
topology: v5e:2x2
jax: 0.10.0
libtpu: 0.0.40
codegen_flags: <defaults>
</compile_context>

<pallas_src>
import functools

import jax
import jax.numpy as jnp
from jax import lax
from jax.experimental import pallas as pl
from jax.experimental.pallas import tpu as pltpu

CFG = dict(
    vocab_size=128,
    context_length=8,
    emb_dim=32,
    n_heads=4,
    n_layers=2,
    drop_rate_emb=0.0,
    drop_rate_attn=0.0,
    drop_rate_shortcut=0.0,
    qkv_bias=False,
)

EPS = 1e-5
_SQRT_2_OVER_PI = 0.7978845608028654   # (2/pi) ** 0.5, hoisted
_MASK_BIAS = -1e30                      # finite "minus infinity" for masking


# ---------------------------------------------------------------------------
# in-kernel helpers (pure jnp, traced inside the Pallas body)
# ---------------------------------------------------------------------------
def _layernorm(x, gamma, beta):
    # matches the book's LayerNorm: unbiased=False variance, eps=1e-5
    mean = jnp.mean(x, axis=-1, keepdims=True)
    var = jnp.mean((x - mean) ** 2, axis=-1, keepdims=True)
    return (x - mean) / jnp.sqrt(var + EPS) * gamma + beta


def _gelu(x):
    # tanh-approximation GELU used in the reference implementation
    return 0.5 * x * (1.0 + jnp.tanh(_SQRT_2_OVER_PI * (x + 0.044715 * x * x * x)))


# ---------------------------------------------------------------------------
# single fused kernel: embeddings -> n_layers transformer blocks -> final
# LayerNorm -> out_head.  No grid; everything resident in VMEM.
# ---------------------------------------------------------------------------
def gpt_fused_kernel(idx_ref, tok_ref, pos_ref, mask_ref,
                     wqkv_ref, wo_ref, bo_ref,
                     w1_ref, b1_ref, w2_ref, b2_ref,
                     g1_ref, s1_ref, g2_ref, s2_ref,
                     gf_ref, sf_ref, wout_ref,
                     o_ref, *, num_heads, num_layers):
    f32 = jnp.float32
    N = idx_ref.shape[0]                 # B*T flattened rows
    V, D = tok_ref.shape
    hd = D // num_heads
    scale = 1.0 / (hd ** 0.5)

    # ---- token embedding via one-hot matmul + positional add (fused gather) ----
    ids = idx_ref[...]                                               # (N, 1) int32
    onehot = (lax.broadcasted_iota(jnp.int32, (N, V), 1) == ids).astype(f32)
    x = jnp.dot(onehot, tok_ref[...], preferred_element_type=f32) + pos_ref[...]
    # drop_emb is identity (eval mode)

    mask_bias = mask_ref[...]                                        # (N, N) additive

    for l in range(num_layers):          # static unrolled layer loop, x stays in VMEM
        # ----- attention sub-block -----
        h = _layernorm(x, g1_ref[l], s1_ref[l])
        qkv = jnp.dot(h, wqkv_ref[l], preferred_element_type=f32)    # (N, 3D), qkv_bias=False
        q = qkv[:, 0:D]
        k = qkv[:, D:2 * D]
        v = qkv[:, 2 * D:3 * D]

        # batch heads: (H, N, hd)
        qh = jnp.stack([q[:, i * hd:(i + 1) * hd] for i in range(num_heads)], axis=0)
        kh = jnp.stack([k[:, i * hd:(i + 1) * hd] for i in range(num_heads)], axis=0)
        vh = jnp.stack([v[:, i * hd:(i + 1) * hd] for i in range(num_heads)], axis=0)

        sc = jnp.einsum('hqd,hkd->hqk', qh, kh,
                        preferred_element_type=f32) * scale          # (H, N, N)
        sc = sc + mask_bias                                          # broadcast over heads
        m = jnp.max(sc, axis=-1, keepdims=True)
        p = jnp.exp(sc - m)                                          # masked entries -> 0
        attn = p / jnp.sum(p, axis=-1, keepdims=True)                # dropout_attn = identity
        ctxh = jnp.einsum('hqk,hkd->hqd', attn, vh,
                          preferred_element_type=f32)                # (H, N, hd)
        ctx = jnp.concatenate([ctxh[i] for i in range(num_heads)], axis=-1)   # (N, D)

        att_out = jnp.dot(ctx, wo_ref[l], preferred_element_type=f32) + bo_ref[l]
        x = x + att_out                                              # residual (dropout = id)

        # ----- feed-forward sub-block -----
        h = _layernorm(x, g2_ref[l], s2_ref[l])
        h1 = jnp.dot(h, w1_ref[l], preferred_element_type=f32) + b1_ref[l]
        h1 = _gelu(h1)
        h2 = jnp.dot(h1, w2_ref[l], preferred_element_type=f32) + b2_ref[l]
        x = x + h2                                                   # residual (dropout = id)

    # ----- final LayerNorm + out_head (lane-dense 128-wide store) -----
    h = _layernorm(x, gf_ref[...], sf_ref[...])
    o_ref[...] = jnp.dot(h, wout_ref[...],
                         preferred_element_type=f32).astype(o_ref.dtype)


# ---------------------------------------------------------------------------
# wrapper: one pallas_call for the whole forward pass
# ---------------------------------------------------------------------------
def gpt_forward(in_idx, params):
    B, T = in_idx.shape
    V, D = params['tok_emb'].shape
    Vout = params['out_w'].shape[1]
    N = B * T

    idx2d = in_idx.reshape(N, 1).astype(jnp.int32)
    pos_tiled = jnp.tile(params['pos_emb'][:T], (B, 1))              # (N, D)

    # combined "same sequence" + causal additive mask; trace-time constant
    rows = jnp.arange(N)
    cols = jnp.arange(N)
    same_seq = (rows[:, None] // T) == (cols[None, :] // T)
    causal = (cols[None, :] % T) <= (rows[:, None] % T)
    mask_bias = jnp.where(same_seq & causal, 0.0, _MASK_BIAS).astype(jnp.float32)

    args = [idx2d, params['tok_emb'], pos_tiled, mask_bias,
            params['wqkv'], params['wo'], params['bo'],
            params['w1'], params['b1'], params['w2'], params['b2'],
            params['g1'], params['s1'], params['g2'], params['s2'],
            params['final_g'], params['final_s'], params['out_w']]

    kernel = functools.partial(gpt_fused_kernel,
                               num_heads=CFG['n_heads'],
                               num_layers=CFG['n_layers'])

    logits2d = pl.pallas_call(
        kernel,
        out_shape=jax.ShapeDtypeStruct((N, Vout), jnp.float32),
        in_specs=[pl.BlockSpec(memory_space=pltpu.MemorySpace.VMEM)
                  for _ in args],
        out_specs=pl.BlockSpec(memory_space=pltpu.MemorySpace.VMEM),
    )(*args)

    return logits2d.reshape(B, T, Vout)


# ---------------------------------------------------------------------------
# deterministic synthetic parameter init (per-layer params stacked on axis 0)
# ---------------------------------------------------------------------------
def init_params(key, cfg):
    D = cfg['emb_dim']
    V = cfg['vocab_size']
    C = cfg['context_length']
    L = cfg['n_layers']
    H4 = 4 * D
    std = 0.02

    def nxt():
        nonlocal key
        key, sub = jax.random.split(key)
        return sub

    params = dict(
        tok_emb=jax.random.normal(nxt(), (V, D), jnp.float32) * std,
        pos_emb=jax.random.normal(nxt(), (C, D), jnp.float32) * std,
        # fused QKV weight (qkv_bias=False), pre-transposed to (in, out)
        wqkv=jax.random.normal(nxt(), (L, D, 3 * D), jnp.float32) * std,
        wo=jax.random.normal(nxt(), (L, D, D), jnp.float32) * std,
        bo=jnp.zeros((L, 1, D), jnp.float32),
        w1=jax.random.normal(nxt(), (L, D, H4), jnp.float32) * std,
        b1=jnp.zeros((L, 1, H4), jnp.float32),
        w2=jax.random.normal(nxt(), (L, H4, D), jnp.float32) * std,
        b2=jnp.zeros((L, 1, D), jnp.float32),
        g1=jnp.ones((L, 1, D), jnp.float32),
        s1=jnp.zeros((L, 1, D), jnp.float32),
        g2=jnp.ones((L, 1, D), jnp.float32),
        s2=jnp.zeros((L, 1, D), jnp.float32),
        final_g=jnp.ones((1, D), jnp.float32),
        final_s=jnp.zeros((1, D), jnp.float32),
        out_w=jax.random.normal(nxt(), (D, V), jnp.float32) * std,
    )
    return params


if __name__ == "__main__":
    key = jax.random.PRNGKey(0)
    pkey, ikey = jax.random.split(key)
    params = init_params(pkey, CFG)

    B, T = 2, CFG['context_length']
    in_idx = jax.random.randint(ikey, (B, T), 0, CFG['vocab_size'],
                                dtype=jnp.int32)

    logits = jax.jit(gpt_forward)(in_idx, params)
    logits = jax.block_until_ready(logits)
    assert logits.shape == (B, T, CFG['vocab_size'])
    assert bool(jnp.all(jnp.isfinite(logits)))
    print("KERNEL_OK")
</pallas_src>

<mosaic_0001>
module attributes {stable_mosaic.version = 11 : i64} {
  func.func @gpt_fused_kernel(%arg0: memref<16x1xi32, #tpu.memory_space<vmem>>, %arg1: memref<128x32xf32, #tpu.memory_space<vmem>>, %arg2: memref<16x32xf32, #tpu.memory_space<vmem>>, %arg3: memref<16x16xf32, #tpu.memory_space<vmem>>, %arg4: memref<2x32x96xf32, #tpu.memory_space<vmem>>, %arg5: memref<2x32x32xf32, #tpu.memory_space<vmem>>, %arg6: memref<2x1x32xf32, #tpu.memory_space<vmem>>, %arg7: memref<2x32x128xf32, #tpu.memory_space<vmem>>, %arg8: memref<2x1x128xf32, #tpu.memory_space<vmem>>, %arg9: memref<2x128x32xf32, #tpu.memory_space<vmem>>, %arg10: memref<2x1x32xf32, #tpu.memory_space<vmem>>, %arg11: memref<2x1x32xf32, #tpu.memory_space<vmem>>, %arg12: memref<2x1x32xf32, #tpu.memory_space<vmem>>, %arg13: memref<2x1x32xf32, #tpu.memory_space<vmem>>, %arg14: memref<2x1x32xf32, #tpu.memory_space<vmem>>, %arg15: memref<1x32xf32, #tpu.memory_space<vmem>>, %arg16: memref<1x32xf32, #tpu.memory_space<vmem>>, %arg17: memref<32x128xf32, #tpu.memory_space<vmem>>, %arg18: memref<16x128xf32, #tpu.memory_space<vmem>>) attributes {dimension_semantics = [], scalar_prefetch = 0 : i64, scratch_operands = 0 : i64, tpu.core_type = #tpu.core_type<tc>} {
    %c0 = arith.constant 0 : index
    %c0_0 = arith.constant 0 : index
    %0 = vector.load %arg0[%c0, %c0_0] : memref<16x1xi32, #tpu.memory_space<vmem>>, vector<16x1xi32>
    %1 = tpu.iota {dimensions = array<i32: 1>} : vector<16x128xi32>
    %2 = vector.broadcast %0 : vector<16x1xi32> to vector<16x128xi32>
    %3 = arith.cmpi eq, %1, %2 : vector<16x128xi32>
    %4 = arith.extui %3 : vector<16x128xi1> to vector<16x128xi32>
    %5 = arith.sitofp %4 : vector<16x128xi32> to vector<16x128xf32>
    %c0_1 = arith.constant 0 : index
    %c0_2 = arith.constant 0 : index
    %6 = vector.load %arg1[%c0_1, %c0_2] : memref<128x32xf32, #tpu.memory_space<vmem>>, vector<128x32xf32>
    %cst = arith.constant dense<0.000000e+00> : vector<16x32xf32>
    %7 = tpu.matmul %5, %6, %cst {dimension_numbers = #tpu.dot_dimension_numbers<[1], [0], [0], [1], [0, 0, 1, 1], [], []>} : vector<16x128xf32>, vector<128x32xf32>, vector<16x32xf32> -> vector<16x32xf32>
    %c0_3 = arith.constant 0 : index
    %c0_4 = arith.constant 0 : index
    %8 = vector.load %arg2[%c0_3, %c0_4] : memref<16x32xf32, #tpu.memory_space<vmem>>, vector<16x32xf32>
    %9 = arith.addf %7, %8 : vector<16x32xf32>
    %c0_5 = arith.constant 0 : index
    %c0_6 = arith.constant 0 : index
    %10 = vector.load %arg3[%c0_5, %c0_6] : memref<16x16xf32, #tpu.memory_space<vmem>>, vector<16x16xf32>
    %c0_7 = arith.constant 0 : index
    %c0_8 = arith.constant 0 : index
    %c0_9 = arith.constant 0 : index
    %11 = vector.load %arg11[%c0_7, %c0_8, %c0_9] : memref<2x1x32xf32, #tpu.memory_space<vmem>>, vector<1x1x32xf32>
    %12 = vector.shape_cast %11 : vector<1x1x32xf32> to vector<1x32xf32>
    %c0_10 = arith.constant 0 : index
    %c0_11 = arith.constant 0 : index
    %c0_12 = arith.constant 0 : index
    %13 = vector.load %arg12[%c0_10, %c0_11, %c0_12] : memref<2x1x32xf32, #tpu.memory_space<vmem>>, vector<1x1x32xf32>
    %14 = vector.shape_cast %13 : vector<1x1x32xf32> to vector<1x32xf32>
    %cst_13 = arith.constant dense<0.000000e+00> : vector<16xf32>
    %15 = vector.multi_reduction <add>, %9, %cst_13 [1] : vector<16x32xf32> to vector<16xf32>
    %16 = vector.shape_cast %15 : vector<16xf32> to vector<16x1xf32>
    %cst_14 = arith.constant 3.200000e+01 : f32
    %17 = vector.broadcast %cst_14 : f32 to vector<16x1xf32>
    %18 = arith.divf %16, %17 : vector<16x1xf32>
    %19 = vector.broadcast %18 : vector<16x1xf32> to vector<16x32xf32>
    %20 = arith.subf %9, %19 : vector<16x32xf32>
    %21 = arith.mulf %20, %20 : vector<16x32xf32>
    %cst_15 = arith.constant dense<0.000000e+00> : vector<16xf32>
    %22 = vector.multi_reduction <add>, %21, %cst_15 [1] : vector<16x32xf32> to vector<16xf32>
    %23 = vector.shape_cast %22 : vector<16xf32> to vector<16x1xf32>
    %cst_16 = arith.constant 3.200000e+01 : f32
    %24 = vector.broadcast %cst_16 : f32 to vector<16x1xf32>
    %25 = arith.divf %23, %24 : vector<16x1xf32>
    %26 = vector.broadcast %18 : vector<16x1xf32> to vector<16x32xf32>
    %27 = arith.subf %9, %26 : vector<16x32xf32>
    %cst_17 = arith.constant 9.99999974E-6 : f32
    %28 = vector.broadcast %cst_17 : f32 to vector<16x1xf32>
    %29 = arith.addf %25, %28 : vector<16x1xf32>
    %30 = math.sqrt %29 : vector<16x1xf32>
    %31 = vector.broadcast %30 : vector<16x1xf32> to vector<16x32xf32>
    %32 = arith.divf %27, %31 : vector<16x32xf32>
    %33 = vector.broadcast %12 : vector<1x32xf32> to vector<16x32xf32>
    %34 = arith.mulf %32, %33 : vector<16x32xf32>
    %35 = vector.broadcast %14 : vector<1x32xf32> to vector<16x32xf32>
    %36 = arith.addf %34, %35 : vector<16x32xf32>
    %c0_18 = arith.constant 0 : index
    %c0_19 = arith.constant 0 : index
    %c0_20 = arith.constant 0 : index
    %37 = vector.load %arg4[%c0_18, %c0_19, %c0_20] : memref<2x32x96xf32, #tpu.memory_space<vmem>>, vector<1x32x96xf32>
    %38 = vector.shape_cast %37 : vector<1x32x96xf32> to vector<32x96xf32>
    %cst_21 = arith.constant dense<0.000000e+00> : vector<16x96xf32>
    %39 = tpu.matmul %36, %38, %cst_21 {dimension_numbers = #tpu.dot_dimension_numbers<[1], [0], [0], [1], [0, 0, 1, 1], [], []>} : vector<16x32xf32>, vector<32x96xf32>, vector<16x96xf32> -> vector<16x96xf32>
    %40 = vector.extract_strided_slice %39 {offsets = [0, 0], sizes = [16, 32], strides = [1, 1]} : vector<16x96xf32> to vector<16x32xf32>
    %41 = vector.extract_strided_slice %39 {offsets = [0, 32], sizes = [16, 32], strides = [1, 1]} : vector<16x96xf32> to vector<16x32xf32>
    %42 = vector.extract_strided_slice %39 {offsets = [0, 64], sizes = [16, 32], strides = [1, 1]} : vector<16x96xf32> to vector<16x32xf32>
    %43 = vector.extract_strided_slice %40 {offsets = [0, 0], sizes = [16, 8], strides = [1, 1]} : vector<16x32xf32> to vector<16x8xf32>
    %44 = vector.extract_strided_slice %40 {offsets = [0, 8], sizes = [16, 8], strides = [1, 1]} : vector<16x32xf32> to vector<16x8xf32>
    %45 = vector.extract_strided_slice %40 {offsets = [0, 16], sizes = [16, 8], strides = [1, 1]} : vector<16x32xf32> to vector<16x8xf32>
    %46 = vector.extract_strided_slice %40 {offsets = [0, 24], sizes = [16, 8], strides = [1, 1]} : vector<16x32xf32> to vector<16x8xf32>
    %47 = vector.shape_cast %43 : vector<16x8xf32> to vector<1x16x8xf32>
    %48 = vector.shape_cast %44 : vector<16x8xf32> to vector<1x16x8xf32>
    %49 = vector.shape_cast %45 : vector<16x8xf32> to vector<1x16x8xf32>
    %50 = vector.shape_cast %46 : vector<16x8xf32> to vector<1x16x8xf32>
    %51 = tpu.concatenate %47, %48, %49, %50 in 0 : vector<1x16x8xf32>, vector<1x16x8xf32>, vector<1x16x8xf32>, vector<1x16x8xf32> -> vector<4x16x8xf32>
    %52 = vector.extract_strided_slice %41 {offsets = [0, 0], sizes = [16, 8], strides = [1, 1]} : vector<16x32xf32> to vector<16x8xf32>
    %53 = vector.extract_strided_slice %41 {offsets = [0, 8], sizes = [16, 8], strides = [1, 1]} : vector<16x32xf32> to vector<16x8xf32>
    %54 = vector.extract_strided_slice %41 {offsets = [0, 16], sizes = [16, 8], strides = [1, 1]} : vector<16x32xf32> to vector<16x8xf32>
    %55 = vector.extract_strided_slice %41 {offsets = [0, 24], sizes = [16, 8], strides = [1, 1]} : vector<16x32xf32> to vector<16x8xf32>
    %56 = vector.shape_cast %52 : vector<16x8xf32> to vector<1x16x8xf32>
    %57 = vector.shape_cast %53 : vector<16x8xf32> to vector<1x16x8xf32>
    %58 = vector.shape_cast %54 : vector<16x8xf32> to vector<1x16x8xf32>
    %59 = vector.shape_cast %55 : vector<16x8xf32> to vector<1x16x8xf32>
    %60 = tpu.concatenate %56, %57, %58, %59 in 0 : vector<1x16x8xf32>, vector<1x16x8xf32>, vector<1x16x8xf32>, vector<1x16x8xf32> -> vector<4x16x8xf32>
    %61 = vector.extract_strided_slice %42 {offsets = [0, 0], sizes = [16, 8], strides = [1, 1]} : vector<16x32xf32> to vector<16x8xf32>
    %62 = vector.extract_strided_slice %42 {offsets = [0, 8], sizes = [16, 8], strides = [1, 1]} : vector<16x32xf32> to vector<16x8xf32>
    %63 = vector.extract_strided_slice %42 {offsets = [0, 16], sizes = [16, 8], strides = [1, 1]} : vector<16x32xf32> to vector<16x8xf32>
    %64 = vector.extract_strided_slice %42 {offsets = [0, 24], sizes = [16, 8], strides = [1, 1]} : vector<16x32xf32> to vector<16x8xf32>
    %65 = vector.shape_cast %61 : vector<16x8xf32> to vector<1x16x8xf32>
    %66 = vector.shape_cast %62 : vector<16x8xf32> to vector<1x16x8xf32>
    %67 = vector.shape_cast %63 : vector<16x8xf32> to vector<1x16x8xf32>
    %68 = vector.shape_cast %64 : vector<16x8xf32> to vector<1x16x8xf32>
    %69 = tpu.concatenate %65, %66, %67, %68 in 0 : vector<1x16x8xf32>, vector<1x16x8xf32>, vector<1x16x8xf32>, vector<1x16x8xf32> -> vector<4x16x8xf32>
    "tpu.trace_start"() <{level = 10 : i32, message = "hqd,hkd->hqk"}> : () -> ()
    %cst_22 = arith.constant dense<0.000000e+00> : vector<4x16x16xf32>
    %70 = tpu.matmul %51, %60, %cst_22 {dimension_numbers = #tpu.dot_dimension_numbers<[2], [2], [1], [1], [0, 0, 0, 1, 1, 1], [0], [0]>} : vector<4x16x8xf32>, vector<4x16x8xf32>, vector<4x16x16xf32> -> vector<4x16x16xf32>
    "tpu.trace_stop"() : () -> ()
    %cst_23 = arith.constant 0.353553385 : f32
    %71 = vector.broadcast %cst_23 : f32 to vector<4x16x16xf32>
    %72 = arith.mulf %70, %71 : vector<4x16x16xf32>
    %73 = vector.shape_cast %10 : vector<16x16xf32> to vector<1x16x16xf32>
    %74 = vector.broadcast %73 : vector<1x16x16xf32> to vector<4x16x16xf32>
    %75 = arith.addf %72, %74 : vector<4x16x16xf32>
    %cst_24 = arith.constant dense<0xFF800000> : vector<4x16xf32>
    %76 = vector.multi_reduction <maximumf>, %75, %cst_24 [2] : vector<4x16x16xf32> to vector<4x16xf32>
    %77 = vector.shape_cast %76 : vector<4x16xf32> to vector<4x16x1xf32>
    %78 = vector.broadcast %77 : vector<4x16x1xf32> to vector<4x16x16xf32>
    %79 = arith.subf %75, %78 : vector<4x16x16xf32>
    %80 = math.exp %79 : vector<4x16x16xf32>
    %cst_25 = arith.constant dense<0.000000e+00> : vector<4x16xf32>
    %81 = vector.multi_reduction <add>, %80, %cst_25 [2] : vector<4x16x16xf32> to vector<4x16xf32>
    %82 = vector.shape_cast %81 : vector<4x16xf32> to vector<4x16x1xf32>
    %83 = vector.broadcast %82 : vector<4x16x1xf32> to vector<4x16x16xf32>
    %84 = arith.divf %80, %83 : vector<4x16x16xf32>
    "tpu.trace_start"() <{level = 10 : i32, message = "hqk,hkd->hqd"}> : () -> ()
    %cst_26 = arith.constant dense<0.000000e+00> : vector<4x16x8xf32>
    %85 = tpu.matmul %84, %69, %cst_26 {dimension_numbers = #tpu.dot_dimension_numbers<[2], [1], [1], [2], [0, 0, 0, 1, 1, 2], [0], [0]>} : vector<4x16x16xf32>, vector<4x16x8xf32>, vector<4x16x8xf32> -> vector<4x16x8xf32>
    "tpu.trace_stop"() : () -> ()
    %86 = vector.extract_strided_slice %85 {offsets = [0, 0, 0], sizes = [1, 16, 8], strides = [1, 1, 1]} : vector<4x16x8xf32> to vector<1x16x8xf32>
    %87 = vector.shape_cast %86 : vector<1x16x8xf32> to vector<16x8xf32>
    %88 = vector.extract_strided_slice %85 {offsets = [1, 0, 0], sizes = [1, 16, 8], strides = [1, 1, 1]} : vector<4x16x8xf32> to vector<1x16x8xf32>
    %89 = vector.shape_cast %88 : vector<1x16x8xf32> to vector<16x8xf32>
    %90 = vector.extract_strided_slice %85 {offsets = [2, 0, 0], sizes = [1, 16, 8], strides = [1, 1, 1]} : vector<4x16x8xf32> to vector<1x16x8xf32>
    %91 = vector.shape_cast %90 : vector<1x16x8xf32> to vector<16x8xf32>
    %92 = vector.extract_strided_slice %85 {offsets = [3, 0, 0], sizes = [1, 16, 8], strides = [1, 1, 1]} : vector<4x16x8xf32> to vector<1x16x8xf32>
    %93 = vector.shape_cast %92 : vector<1x16x8xf32> to vector<16x8xf32>
    %94 = tpu.concatenate %87, %89, %91, %93 in 1 : vector<16x8xf32>, vector<16x8xf32>, vector<16x8xf32>, vector<16x8xf32> -> vector<16x32xf32>
    %c0_27 = arith.constant 0 : index
    %c0_28 = arith.constant 0 : index
    %c0_29 = arith.constant 0 : index
    %95 = vector.load %arg5[%c0_27, %c0_28, %c0_29] : memref<2x32x32xf32, #tpu.memory_space<vmem>>, vector<1x32x32xf32>
    %96 = vector.shape_cast %95 : vector<1x32x32xf32> to vector<32x32xf32>
    %cst_30 = arith.constant dense<0.000000e+00> : vector<16x32xf32>
    %97 = tpu.matmul %94, %96, %cst_30 {dimension_numbers = #tpu.dot_dimension_numbers<[1], [0], [0], [1], [0, 0, 1, 1], [], []>} : vector<16x32xf32>, vector<32x32xf32>, vector<16x32xf32> -> vector<16x32xf32>
    %c0_31 = arith.constant 0 : index
    %c0_32 = arith.constant 0 : index
    %c0_33 = arith.constant 0 : index
    %98 = vector.load %arg6[%c0_31, %c0_32, %c0_33] : memref<2x1x32xf32, #tpu.memory_space<vmem>>, vector<1x1x32xf32>
    %99 = vector.shape_cast %98 : vector<1x1x32xf32> to vector<1x32xf32>
    %100 = vector.broadcast %99 : vector<1x32xf32> to vector<16x32xf32>
    %101 = arith.addf %97, %100 : vector<16x32xf32>
    %102 = arith.addf %9, %101 : vector<16x32xf32>
    %c0_34 = arith.constant 0 : index
    %c0_35 = arith.constant 0 : index
    %c0_36 = arith.constant 0 : index
    %103 = vector.load %arg13[%c0_34, %c0_35, %c0_36] : memref<2x1x32xf32, #tpu.memory_space<vmem>>, vector<1x1x32xf32>
    %104 = vector.shape_cast %103 : vector<1x1x32xf32> to vector<1x32xf32>
    %c0_37 = arith.constant 0 : index
    %c0_38 = arith.constant 0 : index
    %c0_39 = arith.constant 0 : index
    %105 = vector.load %arg14[%c0_37, %c0_38, %c0_39] : memref<2x1x32xf32, #tpu.memory_space<vmem>>, vector<1x1x32xf32>
    %106 = vector.shape_cast %105 : vector<1x1x32xf32> to vector<1x32xf32>
    %cst_40 = arith.constant dense<0.000000e+00> : vector<16xf32>
    %107 = vector.multi_reduction <add>, %102, %cst_40 [1] : vector<16x32xf32> to vector<16xf32>
    %108 = vector.shape_cast %107 : vector<16xf32> to vector<16x1xf32>
    %cst_41 = arith.constant 3.200000e+01 : f32
    %109 = vector.broadcast %cst_41 : f32 to vector<16x1xf32>
    %110 = arith.divf %108, %109 : vector<16x1xf32>
    %111 = vector.broadcast %110 : vector<16x1xf32> to vector<16x32xf32>
    %112 = arith.subf %102, %111 : vector<16x32xf32>
    %113 = arith.mulf %112, %112 : vector<16x32xf32>
    %cst_42 = arith.constant dense<0.000000e+00> : vector<16xf32>
    %114 = vector.multi_reduction <add>, %113, %cst_42 [1] : vector<16x32xf32> to vector<16xf32>
    %115 = vector.shape_cast %114 : vector<16xf32> to vector<16x1xf32>
    %cst_43 = arith.constant 3.200000e+01 : f32
    %116 = vector.broadcast %cst_43 : f32 to vector<16x1xf32>
    %117 = arith.divf %115, %116 : vector<16x1xf32>
    %118 = vector.broadcast %110 : vector<16x1xf32> to vector<16x32xf32>
    %119 = arith.subf %102, %118 : vector<16x32xf32>
    %cst_44 = arith.constant 9.99999974E-6 : f32
    %120 = vector.broadcast %cst_44 : f32 to vector<16x1xf32>
    %121 = arith.addf %117, %120 : vector<16x1xf32>
    %122 = math.sqrt %121 : vector<16x1xf32>
    %123 = vector.broadcast %122 : vector<16x1xf32> to vector<16x32xf32>
    %124 = arith.divf %119, %123 : vector<16x32xf32>
    %125 = vector.broadcast %104 : vector<1x32xf32> to vector<16x32xf32>
    %126 = arith.mulf %124, %125 : vector<16x32xf32>
    %127 = vector.broadcast %106 : vector<1x32xf32> to vector<16x32xf32>
    %128 = arith.addf %126, %127 : vector<16x32xf32>
    %c0_45 = arith.constant 0 : index
    %c0_46 = arith.constant 0 : index
    %c0_47 = arith.constant 0 : index
    %129 = vector.load %arg7[%c0_45, %c0_46, %c0_47] : memref<2x32x128xf32, #tpu.memory_space<vmem>>, vector<1x32x128xf32>
    %130 = vector.shape_cast %129 : vector<1x32x128xf32> to vector<32x128xf32>
    %cst_48 = arith.constant dense<0.000000e+00> : vector<16x128xf32>
    %131 = tpu.matmul %128, %130, %cst_48 {dimension_numbers = #tpu.dot_dimension_numbers<[1], [0], [0], [1], [0, 0, 1, 1], [], []>} : vector<16x32xf32>, vector<32x128xf32>, vector<16x128xf32> -> vector<16x128xf32>
    %c0_49 = arith.constant 0 : index
    %c0_50 = arith.constant 0 : index
    %c0_51 = arith.constant 0 : index
    %132 = vector.load %arg8[%c0_49, %c0_50, %c0_51] : memref<2x1x128xf32, #tpu.memory_space<vmem>>, vector<1x1x128xf32>
    %133 = vector.shape_cast %132 : vector<1x1x128xf32> to vector<1x128xf32>
    %134 = vector.broadcast %133 : vector<1x128xf32> to vector<16x128xf32>
    %135 = arith.addf %131, %134 : vector<16x128xf32>
    %cst_52 = arith.constant 5.000000e-01 : f32
    %136 = vector.broadcast %cst_52 : f32 to vector<16x128xf32>
    %137 = arith.mulf %136, %135 : vector<16x128xf32>
    %cst_53 = arith.constant 4.471500e-02 : f32
    %138 = vector.broadcast %cst_53 : f32 to vector<16x128xf32>
    %139 = arith.mulf %138, %135 : vector<16x128xf32>
    %140 = arith.mulf %139, %135 : vector<16x128xf32>
    %141 = arith.mulf %140, %135 : vector<16x128xf32>
    %142 = arith.addf %135, %141 : vector<16x128xf32>
    %cst_54 = arith.constant 0.797884583 : f32
    %143 = vector.broadcast %cst_54 : f32 to vector<16x128xf32>
    %144 = arith.mulf %143, %142 : vector<16x128xf32>
    %145 = math.tanh %144 : vector<16x128xf32>
    %cst_55 = arith.constant 1.000000e+00 : f32
    %146 = vector.broadcast %cst_55 : f32 to vector<16x128xf32>
    %147 = arith.addf %146, %145 : vector<16x128xf32>
    %148 = arith.mulf %137, %147 : vector<16x128xf32>
    %c0_56 = arith.constant 0 : index
    %c0_57 = arith.constant 0 : index
    %c0_58 = arith.constant 0 : index
    %149 = vector.load %arg9[%c0_56, %c0_57, %c0_58] : memref<2x128x32xf32, #tpu.memory_space<vmem>>, vector<1x128x32xf32>
    %150 = vector.shape_cast %149 : vector<1x128x32xf32> to vector<128x32xf32>
    %cst_59 = arith.constant dense<0.000000e+00> : vector<16x32xf32>
    %151 = tpu.matmul %148, %150, %cst_59 {dimension_numbers = #tpu.dot_dimension_numbers<[1], [0], [0], [1], [0, 0, 1, 1], [], []>} : vector<16x128xf32>, vector<128x32xf32>, vector<16x32xf32> -> vector<16x32xf32>
    %c0_60 = arith.constant 0 : index
    %c0_61 = arith.constant 0 : index
    %c0_62 = arith.constant 0 : index
    %152 = vector.load %arg10[%c0_60, %c0_61, %c0_62] : memref<2x1x32xf32, #tpu.memory_space<vmem>>, vector<1x1x32xf32>
    %153 = vector.shape_cast %152 : vector<1x1x32xf32> to vector<1x32xf32>
    %154 = vector.broadcast %153 : vector<1x32xf32> to vector<16x32xf32>
    %155 = arith.addf %151, %154 : vector<16x32xf32>
    %156 = arith.addf %102, %155 : vector<16x32xf32>
    %c1 = arith.constant 1 : index
    %c0_63 = arith.constant 0 : index
    %c0_64 = arith.constant 0 : index
    %157 = vector.load %arg11[%c1, %c0_63, %c0_64] : memref<2x1x32xf32, #tpu.memory_space<vmem>>, vector<1x1x32xf32>
    %158 = vector.shape_cast %157 : vector<1x1x32xf32> to vector<1x32xf32>
    %c1_65 = arith.constant 1 : index
    %c0_66 = arith.constant 0 : index
    %c0_67 = arith.constant 0 : index
    %159 = vector.load %arg12[%c1_65, %c0_66, %c0_67] : memref<2x1x32xf32, #tpu.memory_space<vmem>>, vector<1x1x32xf32>
    %160 = vector.shape_cast %159 : vector<1x1x32xf32> to vector<1x32xf32>
    %cst_68 = arith.constant dense<0.000000e+00> : vector<16xf32>
    %161 = vector.multi_reduction <add>, %156, %cst_68 [1] : vector<16x32xf32> to vector<16xf32>
    %162 = vector.shape_cast %161 : vector<16xf32> to vector<16x1xf32>
    %cst_69 = arith.constant 3.200000e+01 : f32
    %163 = vector.broadcast %cst_69 : f32 to vector<16x1xf32>
    %164 = arith.divf %162, %163 : vector<16x1xf32>
    %165 = vector.broadcast %164 : vector<16x1xf32> to vector<16x32xf32>
    %166 = arith.subf %156, %165 : vector<16x32xf32>
    %167 = arith.mulf %166, %166 : vector<16x32xf32>
    %cst_70 = arith.constant dense<0.000000e+00> : vector<16xf32>
    %168 = vector.multi_reduction <add>, %167, %cst_70 [1] : vector<16x32xf32> to vector<16xf32>
    %169 = vector.shape_cast %168 : vector<16xf32> to vector<16x1xf32>
    %cst_71 = arith.constant 3.200000e+01 : f32
    %170 = vector.broadcast %cst_71 : f32 to vector<16x1xf32>
    %171 = arith.divf %169, %170 : vector<16x1xf32>
    %172 = vector.broadcast %164 : vector<16x1xf32> to vector<16x32xf32>
    %173 = arith.subf %156, %172 : vector<16x32xf32>
    %cst_72 = arith.constant 9.99999974E-6 : f32
    %174 = vector.broadcast %cst_72 : f32 to vector<16x1xf32>
    %175 = arith.addf %171, %174 : vector<16x1xf32>
    %176 = math.sqrt %175 : vector<16x1xf32>
    %177 = vector.broadcast %176 : vector<16x1xf32> to vector<16x32xf32>
    %178 = arith.divf %173, %177 : vector<16x32xf32>
    %179 = vector.broadcast %158 : vector<1x32xf32> to vector<16x32xf32>
    %180 = arith.mulf %178, %179 : vector<16x32xf32>
    %181 = vector.broadcast %160 : vector<1x32xf32> to vector<16x32xf32>
    %182 = arith.addf %180, %181 : vector<16x32xf32>
    %c1_73 = arith.constant 1 : index
    %c0_74 = arith.constant 0 : index
    %c0_75 = arith.constant 0 : index
    %183 = vector.load %arg4[%c1_73, %c0_74, %c0_75] : memref<2x32x96xf32, #tpu.memory_space<vmem>>, vector<1x32x96xf32>
    %184 = vector.shape_cast %183 : vector<1x32x96xf32> to vector<32x96xf32>
    %cst_76 = arith.constant dense<0.000000e+00> : vector<16x96xf32>
    %185 = tpu.matmul %182, %184, %cst_76 {dimension_numbers = #tpu.dot_dimension_numbers<[1], [0], [0], [1], [0, 0, 1, 1], [], []>} : vector<16x32xf32>, vector<32x96xf32>, vector<16x96xf32> -> vector<16x96xf32>
    %186 = vector.extract_strided_slice %185 {offsets = [0, 0], sizes = [16, 32], strides = [1, 1]} : vector<16x96xf32> to vector<16x32xf32>
    %187 = vector.extract_strided_slice %185 {offsets = [0, 32], sizes = [16, 32], strides = [1, 1]} : vector<16x96xf32> to vector<16x32xf32>
    %188 = vector.extract_strided_slice %185 {offsets = [0, 64], sizes = [16, 32], strides = [1, 1]} : vector<16x96xf32> to vector<16x32xf32>
    %189 = vector.extract_strided_slice %186 {offsets = [0, 0], sizes = [16, 8], strides = [1, 1]} : vector<16x32xf32> to vector<16x8xf32>
    %190 = vector.extract_strided_slice %186 {offsets = [0, 8], sizes = [16, 8], strides = [1, 1]} : vector<16x32xf32> to vector<16x8xf32>
    %191 = vector.extract_strided_slice %186 {offsets = [0, 16], sizes = [16, 8], strides = [1, 1]} : vector<16x32xf32> to vector<16x8xf32>
    %192 = vector.extract_strided_slice %186 {offsets = [0, 24], sizes = [16, 8], strides = [1, 1]} : vector<16x32xf32> to vector<16x8xf32>
    %193 = vector.shape_cast %189 : vector<16x8xf32> to vector<1x16x8xf32>
    %194 = vector.shape_cast %190 : vector<16x8xf32> to vector<1x16x8xf32>
    %195 = vector.shape_cast %191 : vector<16x8xf32> to vector<1x16x8xf32>
    %196 = vector.shape_cast %192 : vector<16x8xf32> to vector<1x16x8xf32>
    %197 = tpu.concatenate %193, %194, %195, %196 in 0 : vector<1x16x8xf32>, vector<1x16x8xf32>, vector<1x16x8xf32>, vector<1x16x8xf32> -> vector<4x16x8xf32>
    %198 = vector.extract_strided_slice %187 {offsets = [0, 0], sizes = [16, 8], strides = [1, 1]} : vector<16x32xf32> to vector<16x8xf32>
    %199 = vector.extract_strided_slice %187 {offsets = [0, 8], sizes = [16, 8], strides = [1, 1]} : vector<16x32xf32> to vector<16x8xf32>
    %200 = vector.extract_strided_slice %187 {offsets = [0, 16], sizes = [16, 8], strides = [1, 1]} : vector<16x32xf32> to vector<16x8xf32>
    %201 = vector.extract_strided_slice %187 {offsets = [0, 24], sizes = [16, 8], strides = [1, 1]} : vector<16x32xf32> to vector<16x8xf32>
    %202 = vector.shape_cast %198 : vector<16x8xf32> to vector<1x16x8xf32>
    %203 = vector.shape_cast %199 : vector<16x8xf32> to vector<1x16x8xf32>
    %204 = vector.shape_cast %200 : vector<16x8xf32> to vector<1x16x8xf32>
    %205 = vector.shape_cast %201 : vector<16x8xf32> to vector<1x16x8xf32>
    %206 = tpu.concatenate %202, %203, %204, %205 in 0 : vector<1x16x8xf32>, vector<1x16x8xf32>, vector<1x16x8xf32>, vector<1x16x8xf32> -> vector<4x16x8xf32>
    %207 = vector.extract_strided_slice %188 {offsets = [0, 0], sizes = [16, 8], strides = [1, 1]} : vector<16x32xf32> to vector<16x8xf32>
    %208 = vector.extract_strided_slice %188 {offsets = [0, 8], sizes = [16, 8], strides = [1, 1]} : vector<16x32xf32> to vector<16x8xf32>
    %209 = vector.extract_strided_slice %188 {offsets = [0, 16], sizes = [16, 8], strides = [1, 1]} : vector<16x32xf32> to vector<16x8xf32>
    %210 = vector.extract_strided_slice %188 {offsets = [0, 24], sizes = [16, 8], strides = [1, 1]} : vector<16x32xf32> to vector<16x8xf32>
    %211 = vector.shape_cast %207 : vector<16x8xf32> to vector<1x16x8xf32>
    %212 = vector.shape_cast %208 : vector<16x8xf32> to vector<1x16x8xf32>
    %213 = vector.shape_cast %209 : vector<16x8xf32> to vector<1x16x8xf32>
    %214 = vector.shape_cast %210 : vector<16x8xf32> to vector<1x16x8xf32>
    %215 = tpu.concatenate %211, %212, %213, %214 in 0 : vector<1x16x8xf32>, vector<1x16x8xf32>, vector<1x16x8xf32>, vector<1x16x8xf32> -> vector<4x16x8xf32>
    "tpu.trace_start"() <{level = 10 : i32, message = "hqd,hkd->hqk"}> : () -> ()
    %cst_77 = arith.constant dense<0.000000e+00> : vector<4x16x16xf32>
    %216 = tpu.matmul %197, %206, %cst_77 {dimension_numbers = #tpu.dot_dimension_numbers<[2], [2], [1], [1], [0, 0, 0, 1, 1, 1], [0], [0]>} : vector<4x16x8xf32>, vector<4x16x8xf32>, vector<4x16x16xf32> -> vector<4x16x16xf32>
    "tpu.trace_stop"() : () -> ()
    %cst_78 = arith.constant 0.353553385 : f32
    %217 = vector.broadcast %cst_78 : f32 to vector<4x16x16xf32>
    %218 = arith.mulf %216, %217 : vector<4x16x16xf32>
    %219 = vector.shape_cast %10 : vector<16x16xf32> to vector<1x16x16xf32>
    %220 = vector.broadcast %219 : vector<1x16x16xf32> to vector<4x16x16xf32>
    %221 = arith.addf %218, %220 : vector<4x16x16xf32>
    %cst_79 = arith.constant dense<0xFF800000> : vector<4x16xf32>
    %222 = vector.multi_reduction <maximumf>, %221, %cst_79 [2] : vector<4x16x16xf32> to vector<4x16xf32>
    %223 = vector.shape_cast %222 : vector<4x16xf32> to vector<4x16x1xf32>
    %224 = vector.broadcast %223 : vector<4x16x1xf32> to vector<4x16x16xf32>
    %225 = arith.subf %221, %224 : vector<4x16x16xf32>
    %226 = math.exp %225 : vector<4x16x16xf32>
    %cst_80 = arith.constant dense<0.000000e+00> : vector<4x16xf32>
    %227 = vector.multi_reduction <add>, %226, %cst_80 [2] : vector<4x16x16xf32> to vector<4x16xf32>
    %228 = vector.shape_cast %227 : vector<4x16xf32> to vector<4x16x1xf32>
    %229 = vector.broadcast %228 : vector<4x16x1xf32> to vector<4x16x16xf32>
    %230 = arith.divf %226, %229 : vector<4x16x16xf32>
    "tpu.trace_start"() <{level = 10 : i32, message = "hqk,hkd->hqd"}> : () -> ()
    %cst_81 = arith.constant dense<0.000000e+00> : vector<4x16x8xf32>
    %231 = tpu.matmul %230, %215, %cst_81 {dimension_numbers = #tpu.dot_dimension_numbers<[2], [1], [1], [2], [0, 0, 0, 1, 1, 2], [0], [0]>} : vector<4x16x16xf32>, vector<4x16x8xf32>, vector<4x16x8xf32> -> vector<4x16x8xf32>
    "tpu.trace_stop"() : () -> ()
    %232 = vector.extract_strided_slice %231 {offsets = [0, 0, 0], sizes = [1, 16, 8], strides = [1, 1, 1]} : vector<4x16x8xf32> to vector<1x16x8xf32>
    %233 = vector.shape_cast %232 : vector<1x16x8xf32> to vector<16x8xf32>
    %234 = vector.extract_strided_slice %231 {offsets = [1, 0, 0], sizes = [1, 16, 8], strides = [1, 1, 1]} : vector<4x16x8xf32> to vector<1x16x8xf32>
    %235 = vector.shape_cast %234 : vector<1x16x8xf32> to vector<16x8xf32>
    %236 = vector.extract_strided_slice %231 {offsets = [2, 0, 0], sizes = [1, 16, 8], strides = [1, 1, 1]} : vector<4x16x8xf32> to vector<1x16x8xf32>
    %237 = vector.shape_cast %236 : vector<1x16x8xf32> to vector<16x8xf32>
    %238 = vector.extract_strided_slice %231 {offsets = [3, 0, 0], sizes = [1, 16, 8], strides = [1, 1, 1]} : vector<4x16x8xf32> to vector<1x16x8xf32>
    %239 = vector.shape_cast %238 : vector<1x16x8xf32> to vector<16x8xf32>
    %240 = tpu.concatenate %233, %235, %237, %239 in 1 : vector<16x8xf32>, vector<16x8xf32>, vector<16x8xf32>, vector<16x8xf32> -> vector<16x32xf32>
    %c1_82 = arith.constant 1 : index
    %c0_83 = arith.constant 0 : index
    %c0_84 = arith.constant 0 : index
    %241 = vector.load %arg5[%c1_82, %c0_83, %c0_84] : memref<2x32x32xf32, #tpu.memory_space<vmem>>, vector<1x32x32xf32>
    %242 = vector.shape_cast %241 : vector<1x32x32xf32> to vector<32x32xf32>
    %cst_85 = arith.constant dense<0.000000e+00> : vector<16x32xf32>
    %243 = tpu.matmul %240, %242, %cst_85 {dimension_numbers = #tpu.dot_dimension_numbers<[1], [0], [0], [1], [0, 0, 1, 1], [], []>} : vector<16x32xf32>, vector<32x32xf32>, vector<16x32xf32> -> vector<16x32xf32>
    %c1_86 = arith.constant 1 : index
    %c0_87 = arith.constant 0 : index
    %c0_88 = arith.constant 0 : index
    %244 = vector.load %arg6[%c1_86, %c0_87, %c0_88] : memref<2x1x32xf32, #tpu.memory_space<vmem>>, vector<1x1x32xf32>
    %245 = vector.shape_cast %244 : vector<1x1x32xf32> to vector<1x32xf32>
    %246 = vector.broadcast %245 : vector<1x32xf32> to vector<16x32xf32>
    %247 = arith.addf %243, %246 : vector<16x32xf32>
    %248 = arith.addf %156, %247 : vector<16x32xf32>
    %c1_89 = arith.constant 1 : index
    %c0_90 = arith.constant 0 : index
    %c0_91 = arith.constant 0 : index
    %249 = vector.load %arg13[%c1_89, %c0_90, %c0_91] : memref<2x1x32xf32, #tpu.memory_space<vmem>>, vector<1x1x32xf32>
    %250 = vector.shape_cast %249 : vector<1x1x32xf32> to vector<1x32xf32>
    %c1_92 = arith.constant 1 : index
    %c0_93 = arith.constant 0 : index
    %c0_94 = arith.constant 0 : index
    %251 = vector.load %arg14[%c1_92, %c0_93, %c0_94] : memref<2x1x32xf32, #tpu.memory_space<vmem>>, vector<1x1x32xf32>
    %252 = vector.shape_cast %251 : vector<1x1x32xf32> to vector<1x32xf32>
    %cst_95 = arith.constant dense<0.000000e+00> : vector<16xf32>
    %253 = vector.multi_reduction <add>, %248, %cst_95 [1] : vector<16x32xf32> to vector<16xf32>
    %254 = vector.shape_cast %253 : vector<16xf32> to vector<16x1xf32>
    %cst_96 = arith.constant 3.200000e+01 : f32
    %255 = vector.broadcast %cst_96 : f32 to vector<16x1xf32>
    %256 = arith.divf %254, %255 : vector<16x1xf32>
    %257 = vector.broadcast %256 : vector<16x1xf32> to vector<16x32xf32>
    %258 = arith.subf %248, %257 : vector<16x32xf32>
    %259 = arith.mulf %258, %258 : vector<16x32xf32>
    %cst_97 = arith.constant dense<0.000000e+00> : vector<16xf32>
    %260 = vector.multi_reduction <add>, %259, %cst_97 [1] : vector<16x32xf32> to vector<16xf32>
    %261 = vector.shape_cast %260 : vector<16xf32> to vector<16x1xf32>
    %cst_98 = arith.constant 3.200000e+01 : f32
    %262 = vector.broadcast %cst_98 : f32 to vector<16x1xf32>
    %263 = arith.divf %261, %262 : vector<16x1xf32>
    %264 = vector.broadcast %256 : vector<16x1xf32> to vector<16x32xf32>
    %265 = arith.subf %248, %264 : vector<16x32xf32>
    %cst_99 = arith.constant 9.99999974E-6 : f32
    %266 = vector.broadcast %cst_99 : f32 to vector<16x1xf32>
    %267 = arith.addf %263, %266 : vector<16x1xf32>
    %268 = math.sqrt %267 : vector<16x1xf32>
    %269 = vector.broadcast %268 : vector<16x1xf32> to vector<16x32xf32>
    %270 = arith.divf %265, %269 : vector<16x32xf32>
    %271 = vector.broadcast %250 : vector<1x32xf32> to vector<16x32xf32>
    %272 = arith.mulf %270, %271 : vector<16x32xf32>
    %273 = vector.broadcast %252 : vector<1x32xf32> to vector<16x32xf32>
    %274 = arith.addf %272, %273 : vector<16x32xf32>
    %c1_100 = arith.constant 1 : index
    %c0_101 = arith.constant 0 : index
    %c0_102 = arith.constant 0 : index
    %275 = vector.load %arg7[%c1_100, %c0_101, %c0_102] : memref<2x32x128xf32, #tpu.memory_space<vmem>>, vector<1x32x128xf32>
    %276 = vector.shape_cast %275 : vector<1x32x128xf32> to vector<32x128xf32>
    %cst_103 = arith.constant dense<0.000000e+00> : vector<16x128xf32>
    %277 = tpu.matmul %274, %276, %cst_103 {dimension_numbers = #tpu.dot_dimension_numbers<[1], [0], [0], [1], [0, 0, 1, 1], [], []>} : vector<16x32xf32>, vector<32x128xf32>, vector<16x128xf32> -> vector<16x128xf32>
    %c1_104 = arith.constant 1 : index
    %c0_105 = arith.constant 0 : index
    %c0_106 = arith.constant 0 : index
    %278 = vector.load %arg8[%c1_104, %c0_105, %c0_106] : memref<2x1x128xf32, #tpu.memory_space<vmem>>, vector<1x1x128xf32>
    %279 = vector.shape_cast %278 : vector<1x1x128xf32> to vector<1x128xf32>
    %280 = vector.broadcast %279 : vector<1x128xf32> to vector<16x128xf32>
    %281 = arith.addf %277, %280 : vector<16x128xf32>
    %cst_107 = arith.constant 5.000000e-01 : f32
    %282 = vector.broadcast %cst_107 : f32 to vector<16x128xf32>
    %283 = arith.mulf %282, %281 : vector<16x128xf32>
    %cst_108 = arith.constant 4.471500e-02 : f32
    %284 = vector.broadcast %cst_108 : f32 to vector<16x128xf32>
    %285 = arith.mulf %284, %281 : vector<16x128xf32>
    %286 = arith.mulf %285, %281 : vector<16x128xf32>
    %287 = arith.mulf %286, %281 : vector<16x128xf32>
    %288 = arith.addf %281, %287 : vector<16x128xf32>
    %cst_109 = arith.constant 0.797884583 : f32
    %289 = vector.broadcast %cst_109 : f32 to vector<16x128xf32>
    %290 = arith.mulf %289, %288 : vector<16x128xf32>
    %291 = math.tanh %290 : vector<16x128xf32>
    %cst_110 = arith.constant 1.000000e+00 : f32
    %292 = vector.broadcast %cst_110 : f32 to vector<16x128xf32>
    %293 = arith.addf %292, %291 : vector<16x128xf32>
    %294 = arith.mulf %283, %293 : vector<16x128xf32>
    %c1_111 = arith.constant 1 : index
    %c0_112 = arith.constant 0 : index
    %c0_113 = arith.constant 0 : index
    %295 = vector.load %arg9[%c1_111, %c0_112, %c0_113] : memref<2x128x32xf32, #tpu.memory_space<vmem>>, vector<1x128x32xf32>
    %296 = vector.shape_cast %295 : vector<1x128x32xf32> to vector<128x32xf32>
    %cst_114 = arith.constant dense<0.000000e+00> : vector<16x32xf32>
    %297 = tpu.matmul %294, %296, %cst_114 {dimension_numbers = #tpu.dot_dimension_numbers<[1], [0], [0], [1], [0, 0, 1, 1], [], []>} : vector<16x128xf32>, vector<128x32xf32>, vector<16x32xf32> -> vector<16x32xf32>
    %c1_115 = arith.constant 1 : index
    %c0_116 = arith.constant 0 : index
    %c0_117 = arith.constant 0 : index
    %298 = vector.load %arg10[%c1_115, %c0_116, %c0_117] : memref<2x1x32xf32, #tpu.memory_space<vmem>>, vector<1x1x32xf32>
    %299 = vector.shape_cast %298 : vector<1x1x32xf32> to vector<1x32xf32>
    %300 = vector.broadcast %299 : vector<1x32xf32> to vector<16x32xf32>
    %301 = arith.addf %297, %300 : vector<16x32xf32>
    %302 = arith.addf %248, %301 : vector<16x32xf32>
    %c0_118 = arith.constant 0 : index
    %c0_119 = arith.constant 0 : index
    %303 = vector.load %arg15[%c0_118, %c0_119] : memref<1x32xf32, #tpu.memory_space<vmem>>, vector<1x32xf32>
    %c0_120 = arith.constant 0 : index
    %c0_121 = arith.constant 0 : index
    %304 = vector.load %arg16[%c0_120, %c0_121] : memref<1x32xf32, #tpu.memory_space<vmem>>, vector<1x32xf32>
    %cst_122 = arith.constant dense<0.000000e+00> : vector<16xf32>
    %305 = vector.multi_reduction <add>, %302, %cst_122 [1] : vector<16x32xf32> to vector<16xf32>
    %306 = vector.shape_cast %305 : vector<16xf32> to vector<16x1xf32>
    %cst_123 = arith.constant 3.200000e+01 : f32
    %307 = vector.broadcast %cst_123 : f32 to vector<16x1xf32>
    %308 = arith.divf %306, %307 : vector<16x1xf32>
    %309 = vector.broadcast %308 : vector<16x1xf32> to vector<16x32xf32>
    %310 = arith.subf %302, %309 : vector<16x32xf32>
    %311 = arith.mulf %310, %310 : vector<16x32xf32>
    %cst_124 = arith.constant dense<0.000000e+00> : vector<16xf32>
    %312 = vector.multi_reduction <add>, %311, %cst_124 [1] : vector<16x32xf32> to vector<16xf32>
    %313 = vector.shape_cast %312 : vector<16xf32> to vector<16x1xf32>
    %cst_125 = arith.constant 3.200000e+01 : f32
    %314 = vector.broadcast %cst_125 : f32 to vector<16x1xf32>
    %315 = arith.divf %313, %314 : vector<16x1xf32>
    %316 = vector.broadcast %308 : vector<16x1xf32> to vector<16x32xf32>
    %317 = arith.subf %302, %316 : vector<16x32xf32>
    %cst_126 = arith.constant 9.99999974E-6 : f32
    %318 = vector.broadcast %cst_126 : f32 to vector<16x1xf32>
    %319 = arith.addf %315, %318 : vector<16x1xf32>
    %320 = math.sqrt %319 : vector<16x1xf32>
    %321 = vector.broadcast %320 : vector<16x1xf32> to vector<16x32xf32>
    %322 = arith.divf %317, %321 : vector<16x32xf32>
    %323 = vector.broadcast %303 : vector<1x32xf32> to vector<16x32xf32>
    %324 = arith.mulf %322, %323 : vector<16x32xf32>
    %325 = vector.broadcast %304 : vector<1x32xf32> to vector<16x32xf32>
    %326 = arith.addf %324, %325 : vector<16x32xf32>
    %c0_127 = arith.constant 0 : index
    %c0_128 = arith.constant 0 : index
    %327 = vector.load %arg17[%c0_127, %c0_128] : memref<32x128xf32, #tpu.memory_space<vmem>>, vector<32x128xf32>
    %cst_129 = arith.constant dense<0.000000e+00> : vector<16x128xf32>
    %328 = tpu.matmul %326, %327, %cst_129 {dimension_numbers = #tpu.dot_dimension_numbers<[1], [0], [0], [1], [0, 0, 1, 1], [], []>} : vector<16x32xf32>, vector<32x128xf32>, vector<16x128xf32> -> vector<16x128xf32>
    %c0_130 = arith.constant 0 : index
    %c0_131 = arith.constant 0 : index
    %329 = vector.load %arg18[%c0_130, %c0_131] : memref<16x128xf32, #tpu.memory_space<vmem>>, vector<16x128xf32>
    tpu.vector_store %arg18[%c0_130, %c0_131], %328 {strides = array<i32>} : memref<16x128xf32, #tpu.memory_space<vmem>>, vector<16x128xf32>,
    return
  }
}

</mosaic_0001>

<bundles_post_ra>
// kernel: gpt_forward.1
= control target key start
LH: loop header
LB: loop body
LE: loop exit
PB: predicated region body
PF: predicated region fallthrough
CT: control target
= control target key end

     0   :  { %s3337_s0 = inlined_call_operand.vmem [shape: s32[16,1], index: 0, kind: input, shape index: {}]   ;;  %s3338_s1 = inlined_call_operand.vmem [shape: f32[128,32], index: 1, kind: input, shape index: {}]   ;;  %s3339_s2 = inlined_call_operand.vmem [shape: f32[16,32], index: 2, kind: input, shape index: {}]   ;;  %s3340_s3 = inlined_call_operand.vmem [shape: f32[16,16], index: 3, kind: input, shape index: {}]   ;;  %s3341_s4 = inlined_call_operand.vmem [shape: f32[2,32,96], index: 4, kind: input, shape index: {}]   ;;  %s3342_s5 = inlined_call_operand.vmem [shape: f32[2,32,32], index: 5, kind: input, shape index: {}]   ;;  %s3343_s6 = inlined_call_operand.vmem [shape: f32[2,1,32], index: 6, kind: input, shape index: {}]   ;;  %s3344_s7 = inlined_call_operand.vmem [shape: f32[2,32,128], index: 7, kind: input, shape index: {}]   ;;  %s3345_s8 = inlined_call_operand.vmem [shape: f32[2,1,128], index: 8, kind: input, shape index: {}]   ;;  %s3346_s9 = inlined_call_operand.vmem [shape: f32[2,128,32], index: 9, kind: input, shape index: {}]   ;;  %s3347_s10 = inlined_call_operand.vmem [shape: f32[2,1,32], index: 10, kind: input, shape index: {}]   ;;  %s3348_s11 = inlined_call_operand.vmem [shape: f32[2,1,32], index: 11, kind: input, shape index: {}]   ;;  %s3349_s12 = inlined_call_operand.vmem [shape: f32[2,1,32], index: 12, kind: input, shape index: {}]   ;;  %s3350_s13 = inlined_call_operand.vmem [shape: f32[2,1,32], index: 13, kind: input, shape index: {}]   ;;  %s3351_s14 = inlined_call_operand.vmem [shape: f32[2,1,32], index: 14, kind: input, shape index: {}]   ;;  %s3352_s15 = inlined_call_operand.vmem [shape: f32[1,32], index: 15, kind: input, shape index: {}]   ;;  %s3353_s16 = inlined_call_operand.vmem [shape: f32[1,32], index: 16, kind: input, shape index: {}]   ;;  %s3354_s17 = inlined_call_operand.vmem [shape: f32[32,128], index: 17, kind: input, shape index: {}]   ;;  %s3355_s18 = inlined_call_operand.hbm [shape: f32[16,128], index: 18, kind: output, shape index: {}]  }
   0x1   :  { %3364 = sst [smem:[#allocation5_spill]] %s3337_s0 }
   0x2   :  { %3365 = sst [smem:[#allocation6_spill]] %s3338_s1 }
   0x3   :  { %3366 = sst [smem:[#allocation7_spill]] %s3339_s2 }
   0x4   :  { %3367 = sst [smem:[#allocation8_spill]] %s3347_s10 }
   0x5   :  { %s3368_s29 = sld [smem:[#allocation5_spill]]  ;;  %v2357_v2 = vmov 0  }
   0x6   :  { %s3369_s10 = sld [smem:[#allocation6_spill]]  ;;  %2158 = vset.pattern.permute.xlu0 %v2357_v2 }
   0xb   :  { %v60_v0 = vld [vmem:[%s3368_s29] sm:$0xff]  ;;  %v61_v6 = vld [vmem:[%s3368_s29 + $0x8] sm:$0xff] }
   0xc   :  { %v91_v1 = vld [vmem:[%s3369_s10 + $0x78] sm:$0xff]  ;;  %v90_v3 = vld [vmem:[%s3369_s10 + $0x70] sm:$0xff]  ;;  %65 = vperm.xlu0 %2158, %v60_v0   ;;  %v89_v4 = vld [vmem:[%s3369_s10 + $0x68] sm:$0xff] }
   0xd   :  { %94 = vmatpush.msra.mxu0 %v91_v1  ;;  %v88_v5 = vld [vmem:[%s3369_s10 + $0x60] sm:$0xff]  ;;  %v87_v7 = vld [vmem:[%s3369_s10 + $0x58] sm:$0xff]  ;;  %v86_v8 = vld [vmem:[%s3369_s10 + $0x50] sm:$0xff] }
   0xe   :  { %v85_v9 = vld [vmem:[%s3369_s10 + $0x48] sm:$0xff] }
   0xf   :  { %95 = vmatpush.msra.mxu0 %v90_v3 }
  0x11   :  { %96 = vmatpush.msra.mxu0 %v89_v4 }
  0x13   :  { %97 = vmatpush.msra.mxu0 %v88_v5 }
  0x14   :  { %68 = vperm.xlu0 %2158, %v61_v6  }
  0x15   :  { %98 = vmatpush.msra.mxu0 %v87_v7 }
  0x17   :  { %99 = vmatpush.msra.mxu0 %v86_v8 }
  0x18   :  { %23 = vsyncpa [#allocation3], 0  ;;  %v84_v10 = vld [vmem:[%s3369_s10 + $0x40] sm:$0xff]  ;;  %v83_v11 = vld [vmem:[%s3369_s10 + $0x38] sm:$0xff]  ;;  %v62_v19 = vlaneseq  ;;  %v2358_v22 = vmov 1.0   ;;  %s3370_s22 = sld [smem:[#allocation7_spill]] }
  0x19   :  { %100 = vmatpush.msra.mxu0 %v85_v9  ;;  %v82_v12 = vld [vmem:[%s3369_s10 + $0x30] sm:$0xff]  ;;  %v81_v13 = vld [vmem:[%s3369_s10 + $0x28] sm:$0xff]  ;;  %v80_v14 = vld [vmem:[%s3369_s10 + $0x20] sm:$0xff]  ;;  %vm121_vm2 = vcmask 261120   ;;  %v2359_v32 = vmov 32.0   ;;  %s2360_s21 = smov 120  }
  0x1a   :  { %v79_v15 = vld [vmem:[%s3369_s10 + $0x18] sm:$0xff]  ;;  %v78_v16 = vld [vmem:[%s3369_s10 + $0x10] sm:$0xff]  ;;  %v77_v17 = vld [vmem:[%s3369_s10 + $0x8] sm:$0xff]  ;;  %v63_v20 = vand.u32 127, %v62_v19  ;;  %2215 = vrcp.f32 %v2359_v32  ;;  %s2363_s2 = smov 112   ;;  %s2364_s27 = smov 64  }
  0x1b   :  { %101 = vmatpush.msra.mxu0 %v84_v10  ;;  %v76_v18 = vld [vmem:[%s3369_s10] sm:$0xff]  ;;  %v218_v49 = vld [vmem:[%s3341_s4 + $0x18] sm:$0xff]  ;;  %v217_v50 = vld [vmem:[%s3341_s4 + $0x10] sm:$0xff]  ;;  %s2362_s10 = smov 104   ;;  %s3362_s28 = smov 8  }
  0x1c   :  { %237 = vmatpush.msra.mxu1 %v218_v49  ;;  %v216_v51 = vld [vmem:[%s3341_s4 + $0x8] sm:$0xff]  ;;  %v215_v52 = vld [vmem:[%s3341_s4] sm:$0xff]  ;;  %s3360_s30 = smov 16   ;;  %s2367_s0 = smov 24  }
  0x1d   :  { %102 = vmatpush.msra.mxu0 %v83_v11  ;;  %s2369_s26 = smov 128  }
  0x1e   :  { %v92_v24 = vld [vmem:[%s3370_s22] sm:$0xff]  ;;  %v93_v28 = vld [vmem:[%s3370_s22 + $0x8] sm:$0xff]  ;;  %238 = vmatpush.msra.mxu1 %v217_v50  ;;  %s2361_s22 = smov 96  }
  0x1f   :  { %103 = vmatpush.msra.mxu0 %v82_v12 }
  0x20   :  { %v2216_v33 = vpop.eup %2215  ;;  %239 = vmatpush.msra.mxu1 %v216_v51 }
  0x21   :  { %104 = vmatpush.msra.mxu0 %v81_v13  ;;  %v129_v34 = vmul.f32 32.0, %v2216_v33  ;;  %vm133_vm3 = vweird.f32 %v2216_v33 }
  0x22   :  { %240 = vmatpush.msra.mxu1 %v215_v52 }
  0x23   :  { %105 = vmatpush.msra.mxu0 %v80_v14  ;;  %v130_v35 = vsub.f32 1.0, %v129_v34 }
  0x25   :  { %106 = vmatpush.msra.mxu0 %v79_v15  ;;  %v131_v36 = vmul.f32 %v2216_v33, %v130_v35 }
  0x27   :  { %107 = vmatpush.msra.mxu0 %v78_v16  ;;  %v132_v37 = vadd.f32 %v2216_v33, %v131_v36 }
  0x29   :  { %108 = vmatpush.msra.mxu0 %v77_v17  ;;  %v2533_v38 = vsel %vm133_vm3, %v2216_v33, %v132_v37 }
  0x2b   :  { %109 = vmatpush.msra.mxu0 %v76_v18 }
  0x7e   :  { %v66_v21 = vpop.permute.xlu0 %65 }
  0x7f   :  { %vm70_vm0 = vcmp.eq.s32.totalorder %v63_v20, %v66_v21 }
  0x80   :  { %2044 = vmatmul.msk.f32.vlgmr.msra.gmra.mxu0 %vm70_vm0, %v2358_v22  ;;  %vm266_vm0 = vcmask 64512  }
  0x86   :  { %v69_v23 = vpop.permute.xlu0 %68 }
  0x87   :  { %vm71_vm1 = vcmp.eq.s32.totalorder %v63_v20, %v69_v23 }
  0x88   :  { %2045 = vmatmul.msk.f32.gmra.mxu0 %vm71_vm1, %v2358_v22  ;;  %vm419_vm1 = vcmask 130048  }
  0xfd   :  { %v111_v25 = vpop.f32.mrf.mxu0 }
  0xfe   :  { %v2522_v26 = vadd.f32 %v111_v25, %v92_v24  ;;  %v2199_v25 = vld [vmem:[%s3348_s11] ss:$0 sm:$0xff] }
 0x100   :  { %v122_v27 = vsel %vm121_vm2, %v2522_v26, 0.0 }
 0x101   :  { %123 = vadd.xlane.f32.xlu1 %v122_v27 }
 0x105   :  { %v114_v29 = vpop.f32.mrf.mxu0 }
 0x106   :  { %v2529_v30 = vadd.f32 %v114_v29, %v93_v28 }
 0x108   :  { %v125_v31 = vsel %vm121_vm2, %v2529_v30, 0.0 }
 0x109   :  { %126 = vadd.xlane.f32.xlu1 %v125_v31  ;;  %v2200_v31 = vld [vmem:[%s3349_s12] ss:$0 sm:$0xff] }
 0x174   :  { %v124_v39 = vpop.xlane.xlu1 %123 }
 0x175   :  { %v135_v40 = vmul.f32 %v2533_v38, %v124_v39 }
 0x177   :  { %v2537_v41 = vsub.f32 %v2522_v26, %v135_v40 }
 0x179   :  { %v139_v42 = vmul.f32 %v2537_v41, %v2537_v41 }
 0x17b   :  { %v141_v43 = vsel %vm121_vm2, %v139_v42, 0.0 }
 0x17c   :  { %142 = vadd.xlane.f32.xlu2 %v141_v43  ;;  %v127_v44 = vpop.xlane.xlu1 %126 }
 0x17d   :  { %v136_v45 = vmul.f32 %v2533_v38, %v127_v44 }
 0x17f   :  { %v2544_v46 = vsub.f32 %v2529_v30, %v136_v45 }
 0x181   :  { %v140_v47 = vmul.f32 %v2544_v46, %v2544_v46 }
 0x183   :  { %v144_v48 = vsel %vm121_vm2, %v140_v47, 0.0 }
 0x184   :  { %145 = vadd.xlane.f32.xlu2 %v144_v48 }
 0x1ef   :  { %v143_v53 = vpop.xlane.xlu2 %142 }
 0x1f0   :  { %v147_v54 = vmul.f32 %v143_v53, %v2533_v38 }
 0x1f2   :  { %v149_v55 = vadd.f32 1e-05, %v147_v54 }
 0x1f4   :  { %2217 = vrsqrt.f32 %v149_v55  ;;  %vm158_vm4 = vcmp.eq.f32.partialorder %v149_v55, inf  ;;  %v161_v5 = vand.u32 2147483648, %v149_v55  ;;  %vm160_vm5 = vcmp.eq.f32.partialorder %v149_v55, 0.0 }
 0x1f7   :  { %v146_v56 = vpop.xlane.xlu2 %145 }
 0x1f8   :  { %v148_v57 = vmul.f32 %v146_v56, %v2533_v38 }
 0x1fa   :  { %v2218_v58 = vpop.eup %2217  ;;  %v150_v59 = vadd.f32 1e-05, %v148_v57 }
 0x1fb   :  { %v152_v60 = vmul.f32 %v2218_v58, %v149_v55 }
 0x1fc   :  { %2219 = vrsqrt.f32 %v150_v59  ;;  %vm170_vm6 = vcmp.eq.f32.partialorder %v150_v59, inf  ;;  %v173_v12 = vand.u32 2147483648, %v150_v59  ;;  %vm172_vm7 = vcmp.eq.f32.partialorder %v150_v59, 0.0 }
 0x1fd   :  { %v153_v61 = vmul.f32 %v2218_v58, %v152_v60 }
 0x1ff   :  { %v154_v62 = vmul.f32 0.5, %v153_v61 }
 0x201   :  { %v155_v63 = vsub.f32 1.5, %v154_v62 }
 0x202   :  { %v2220_v0 = vpop.eup %2219 }
 0x203   :  { %v164_v1 = vmul.f32 %v2220_v0, %v150_v59  ;;  %v156_v2 = vmul.f32 %v2218_v58, %v155_v63  ;;  %v117_v63 = vld [vmem:[%s3340_s3] sm:$0xff] }
 0x205   :  { %v165_v3 = vmul.f32 %v2220_v0, %v164_v1  ;;  %v157_v4 = vmul.f32 %v156_v2, %v149_v55 }
 0x207   :  { %v166_v6 = vmul.f32 0.5, %v165_v3  ;;  %v159_v7 = vsel %vm158_vm4, %v149_v55, %v157_v4  ;;  %v118_v4 = vld [vmem:[%s3340_s3 + $0x8] sm:$0xff] }
 0x208   :  { %v162_v8 = vsel %vm160_vm5, %v161_v5, %v159_v7 }
 0x209   :  { %v167_v9 = vsub.f32 1.5, %v166_v6  ;;  %2221 = vrcp.f32 %v162_v8  ;;  %v186_v18 = vand.u32 2147483648, %v162_v8  ;;  %v184_v20 = vand.u32 2147483647, %v162_v8 }
 0x20a   :  { %vm180_vm9 = vweird.f32 %v162_v8 }
 0x20b   :  { %v168_v10 = vmul.f32 %v2220_v0, %v167_v9  ;;  %v187_v23 = vor.u32 1.1754944e-38, %v186_v18  ;;  %vm185_vm11 = vcmp.eq.f32.partialorder %v184_v20, 8.507059e+37 }
 0x20d   :  { %v169_v11 = vmul.f32 %v168_v10, %v150_v59 }
 0x20f   :  { %v2222_v13 = vpop.eup %2221  ;;  %v171_v14 = vsel %vm170_vm6, %v150_v59, %v169_v11 }
 0x210   :  { %v176_v15 = vmul.f32 %v2222_v13, %v162_v8  ;;  %v174_v16 = vsel %vm172_vm7, %v173_v12, %v171_v14  ;;  %vm181_vm8 = vweird.f32 %v2222_v13 }
 0x211   :  { %2223 = vrcp.f32 %v174_v16  ;;  %vm182_vm10 = vmor %vm180_vm9, %vm181_vm8  ;;  %v201_v33 = vand.u32 2147483648, %v174_v16  ;;  %v199_v36 = vand.u32 2147483647, %v174_v16  ;;  %vm195_vm13 = vweird.f32 %v174_v16 }
 0x212   :  { %v177_v17 = vsub.f32 1.0, %v176_v15 }
 0x213   :  { %v202_v40 = vor.u32 1.1754944e-38, %v201_v33  ;;  %vm200_vm15 = vcmp.eq.f32.partialorder %v199_v36, 8.507059e+37 }
 0x214   :  { %v178_v19 = vmul.f32 %v2222_v13, %v177_v17 }
 0x216   :  { %v179_v21 = vadd.f32 %v2222_v13, %v178_v19 }
 0x217   :  { %v2224_v22 = vpop.eup %2223 }
 0x218   :  { %v183_v24 = vsel %vm182_vm10, %v2222_v13, %v179_v21  ;;  %v191_v27 = vmul.f32 %v2224_v22, %v174_v16  ;;  %vm196_vm12 = vweird.f32 %v2224_v22 }
 0x219   :  { %v188_v28 = vsel %vm185_vm11, %v187_v23, %v183_v24  ;;  %vm197_vm14 = vmor %vm195_vm13, %vm196_vm12 }
 0x21a   :  { %v189_v29 = vmul.f32 %v188_v28, %v2537_v41  ;;  %v192_v32 = vsub.f32 1.0, %v191_v27 }
 0x21c   :  { %v208_v34 = vmul.f32 %v2199_v25, %v189_v29  ;;  %v193_v35 = vmul.f32 %v2224_v22, %v192_v32 }
 0x21e   :  { %v213_v37 = vadd.f32 %v2200_v31, %v208_v34  ;;  %v194_v39 = vadd.f32 %v2224_v22, %v193_v35 }
 0x220   :  { %2046 = vmatmul.msk.f32.vlgmr.msra.gmra.mxu1 %vm121_vm2, %v213_v37  ;;  %v198_v42 = vsel %vm197_vm14, %v2224_v22, %v194_v39 }
 0x221   :  { %v203_v41 = vsel %vm200_vm15, %v202_v40, %v198_v42 }
 0x222   :  { %v204_v43 = vmul.f32 %v203_v41, %v2544_v46 }
 0x224   :  { %v209_v44 = vmul.f32 %v2199_v25, %v204_v43 }
 0x226   :  { %v214_v45 = vadd.f32 %v2200_v31, %v209_v44 }
 0x228   :  { %2047 = vmatmul.msk.f32.gmra.mxu1 %vm121_vm2, %v214_v45 }
 0x29d   :  { %v2573_v47 = vpop.f32.mrf.mxu1 }
 0x29e   :  { %250 = vrot.lane.b32.xlu2 %v2573_v47, %s2360_s21 }
 0x2a5   :  { %v2577_v48 = vpop.f32.mrf.mxu1 }
 0x2a6   :  { %264 = vrot.lane.b32.xlu2 %v2577_v48, %s2361_s22  ;;  %260 = vrot.lane.b32.xlu1 %v2577_v48, %s2362_s10  ;;  %v2159_v40 = vpack.i.bf16 %v2573_v47, %v2577_v48 }
 0x2a7   :  { %252 = vrot.lane.b32.xlu0 %v2577_v48, %s2360_s21 }
 0x2ae   :  { %262 = vrot.lane.b32.xlu1 %v2573_v47, %s2361_s22 }
 0x2af   :  { %258 = vrot.lane.b32.xlu0 %v2573_v47, %s2362_s10 }
 0x2b7   :  { %256 = vrot.lane.b32.xlu0 %v2577_v48, %s2363_s2 }
 0x2bf   :  { %254 = vrot.lane.b32.xlu0 %v2573_v47, %s2363_s2 }
 0x2f8   :  { %v2593_v46 = vpop.permute.xlu2 %250 }
 0x2f9   :  { %298 = vrot.lane.b32.xlu1 %v2593_v46, %s2361_s22 }
 0x300   :  { %v265_v49 = vpop.permute.xlu2 %264 }
 0x301   :  { %2048 = vmatpush.xpose.msk.msra.mxu2 %vm266_vm0, %v265_v49 }
 0x318   :  { %v2598_v50 = vpop.permute.xlu1 %260 }
 0x319   :  { %v2600_v51 = vpop.permute.xlu0 %252  ;;  %370 = vrot.lane.b32.xlu2 %v2598_v50, %s2361_s22 }
 0x31a   :  { %300 = vrot.lane.b32.xlu0 %v2600_v51, %s2361_s22  ;;  %v2174_v49 = vpack.i.bf16 %v2593_v46, %v2600_v51 }
 0x320   :  { %v263_v52 = vpop.permute.xlu1 %262 }
 0x321   :  { %v2606_v53 = vpop.permute.xlu0 %258  ;;  %2049 = vmatpush.xpose.msk.msra.mxu2 %vm266_vm0, %v263_v52 }
 0x322   :  { %368 = vrot.lane.b32.xlu0 %v2606_v53, %s2361_s22 }
 0x324   :  { %2050 = vmatmul.msk.f32.vlgmr.msra.gmra.mxu2 %vm266_vm0, %v2573_v47 }
 0x329   :  { %v2613_v54 = vpop.permute.xlu0 %256 }
 0x32a   :  { %335 = vrot.lane.b32.xlu2 %v2613_v54, %s2361_s22 }
 0x32c   :  { %2051 = vmatmul.msk.f32.gmra.mxu2 %vm266_vm0, %v2577_v48 }
 0x331   :  { %v2619_v55 = vpop.permute.xlu0 %254 }
 0x332   :  { %333 = vrot.lane.b32.xlu1 %v2619_v55, %s2361_s22 }
 0x36b   :  { %v299_v58 = vpop.permute.xlu1 %298 }
 0x373   :  { %v371_v56 = vpop.permute.xlu2 %370 }
 0x374   :  { %2060 = vmatpush.xpose.msk.msrb.mxu2 %vm266_vm0, %v371_v56 }
 0x384   :  { %v336_v59 = vpop.permute.xlu2 %335 }
 0x38c   :  { %v301_v57 = vpop.permute.xlu0 %300 }
 0x38d   :  { %2052 = vmatpush.xpose.msk.msrb.mxu1 %vm266_vm0, %v301_v57  ;;  %2143 = vmatpush.xpose.msk.msra.mxu3 %vm266_vm0, %v301_v57 }
 0x391   :  { %2053 = vmatpush.xpose.msk.msrb.mxu1 %vm266_vm0, %v299_v58  ;;  %2144 = vmatpush.xpose.msk.msra.mxu3 %vm266_vm0, %v299_v58 }
 0x394   :  { %v369_v60 = vpop.permute.xlu0 %368  ;;  %2054 = vmatmul.msk.f32.vlgmr.msrb.gmra.mxu1 %vm266_vm0, %v2593_v46  ;;  %2055 = vmatmul.msk.f32.vlgmr.msra.gmra.mxu3 %vm266_vm0, %v2600_v51 }
 0x395   :  { %2056 = vmatpush.xpose.msk.msra.mxu1 %vm266_vm0, %v336_v59  ;;  %2061 = vmatpush.xpose.msk.msrb.mxu2 %vm266_vm0, %v369_v60 }
 0x398   :  { %2062 = vmatmul.msk.f32.vlgmr.msrb.gmra.mxu2 %vm266_vm0, %v2606_v53 }
 0x3a0   :  { %2063 = vmatmul.msk.f32.gmra.mxu2 %vm266_vm0, %v2598_v50 }
 0x3a4   :  { %v334_v61 = vpop.permute.xlu1 %333 }
 0x3a5   :  { %2057 = vmatpush.xpose.msk.msra.mxu1 %vm266_vm0, %v334_v61 }
 0x3a7   :  { %v292_v62 = vpop.f32.mrf.mxu2 }
 0x3a8   :  { %v403_v0 = vmul.f32 0.35355338, %v292_v62  ;;  %2058 = vmatmul.msk.f32.vlgmr.msra.gmra.mxu1 %vm266_vm0, %v2619_v55 }
 0x3aa   :  { %v411_v1 = vadd.f32 %v403_v0, %v117_v63 }
 0x3ac   :  { %v420_v2 = vsel %vm419_vm1, %v411_v1, -inf }
 0x3ad   :  { %421 = vmax.xlane.f32.xlu0 %v420_v2 }
 0x3af   :  { %v295_v3 = vpop.f32.mrf.mxu2 }
 0x3b0   :  { %v404_v5 = vmul.f32 0.35355338, %v295_v3  ;;  %2059 = vmatmul.msk.f32.gmra.mxu1 %vm266_vm0, %v2613_v54 }
 0x3b2   :  { %v412_v6 = vadd.f32 %v404_v5, %v118_v4 }
 0x3b4   :  { %v423_v7 = vsel %vm419_vm1, %v412_v6, -inf }
 0x3b5   :  { %424 = vmax.xlane.f32.xlu2 %v423_v7 }
 0x411   :  { %v327_v8 = vpop.f32.mrf.mxu1 }
 0x412   :  { %v405_v9 = vmul.f32 0.35355338, %v327_v8 }
 0x414   :  { %v413_v10 = vadd.f32 %v405_v9, %v117_v63 }
 0x416   :  { %v426_v11 = vsel %vm419_vm1, %v413_v10, -inf }
 0x417   :  { %v330_v12 = vpop.f32.mrf.mxu3  ;;  %427 = vmax.xlane.f32.xlu0 %v426_v11 }
 0x418   :  { %v406_v13 = vmul.f32 0.35355338, %v330_v12 }
 0x41a   :  { %v414_v14 = vadd.f32 %v406_v13, %v118_v4 }
 0x41b   :  { %v397_v15 = vpop.f32.mrf.mxu2 }
 0x41c   :  { %v409_v16 = vmul.f32 0.35355338, %v397_v15  ;;  %v429_v17 = vsel %vm419_vm1, %v414_v14, -inf }
 0x41e   :  { %v417_v18 = vadd.f32 %v409_v16, %v117_v63 }
 0x41f   :  { %430 = vmax.xlane.f32.xlu0 %v429_v17 }
 0x420   :  { %v438_v19 = vsel %vm419_vm1, %v417_v18, -inf  ;;  %v422_v23 = vpop.xlane.xlu0 %421 }
 0x421   :  { %439 = vmax.xlane.f32.xlu2 %v438_v19  ;;  %v444_v29 = vsub.f32 %v411_v1, %v422_v23 }
 0x423   :  { %v400_v20 = vpop.f32.mrf.mxu2  ;;  %v452_v32 = vmul.f32 1.442695, %v444_v29 }
 0x424   :  { %v410_v21 = vmul.f32 0.35355338, %v400_v20 }
 0x425   :  { %v362_v22 = vpop.f32.mrf.mxu1  ;;  %2225 = vpow2.f32 %v452_v32 }
 0x426   :  { %v407_v24 = vmul.f32 0.35355338, %v362_v22  ;;  %v418_v25 = vadd.f32 %v410_v21, %v118_v4 }
 0x428   :  { %v441_v27 = vsel %vm419_vm1, %v418_v25, -inf  ;;  %v415_v28 = vadd.f32 %v407_v24, %v117_v63  ;;  %v425_v42 = vpop.xlane.xlu2 %424 }
 0x429   :  { %442 = vmax.xlane.f32.xlu2 %v441_v27  ;;  %v445_v41 = vsub.f32 %v412_v6, %v425_v42 }
 0x42a   :  { %v432_v31 = vsel %vm419_vm1, %v415_v28, -inf }
 0x42b   :  { %433 = vmax.xlane.f32.xlu1 %v432_v31  ;;  %v2657_v37 = vpop.eup %2225  ;;  %v454_v43 = vmul.f32 1.442695, %v445_v41 }
 0x42c   :  { %v468_v39 = vsel %vm419_vm1, %v2657_v37, 0.0 }
 0x42d   :  { %v365_v33 = vpop.f32.mrf.mxu1  ;;  %2227 = vpow2.f32 %v454_v43 }
 0x42e   :  { %v408_v34 = vmul.f32 0.35355338, %v365_v33 }
 0x430   :  { %v416_v35 = vadd.f32 %v408_v34, %v118_v4  ;;  %v2164_v34 = vpack.i.bf16 %v2598_v50, %v2613_v54 }
 0x432   :  { %v435_v36 = vsel %vm419_vm1, %v416_v35, -inf }
 0x433   :  { %436 = vmax.xlane.f32.xlu1 %v435_v36  ;;  %v2664_v44 = vpop.eup %2227 }
 0x434   :  { %v471_v45 = vsel %vm419_vm1, %v2664_v44, 0.0 }
 0x43b   :  { %469 = vadd.xlane.f32.xlu1 %v468_v39 }
 0x441   :  { %2160 = vrot.lane.b32.xlu2 %v2159_v40, %s2364_s27 }
 0x46a   :  { %472 = vadd.xlane.f32.xlu2 %v471_v45 }
 0x482   :  { %2175 = vrot.lane.b32.xlu2 %v2174_v49, %s2364_s27 }
 0x48a   :  { %v428_v52 = vpop.xlane.xlu0 %427 }
 0x48b   :  { %v446_v47 = vsub.f32 %v413_v10, %v428_v52 }
 0x48d   :  { %v456_v48 = vmul.f32 1.442695, %v446_v47 }
 0x48f   :  { %2229 = vpow2.f32 %v456_v48 }
 0x492   :  { %v431_v56 = vpop.xlane.xlu0 %430 }
 0x493   :  { %v447_v61 = vsub.f32 %v414_v14, %v431_v56 }
 0x494   :  { %v440_v57 = vpop.xlane.xlu2 %439 }
 0x495   :  { %v2671_v58 = vpop.eup %2229  ;;  %v450_v59 = vsub.f32 %v417_v18, %v440_v57  ;;  %v458_v63 = vmul.f32 1.442695, %v447_v61 }
 0x496   :  { %v474_v60 = vsel %vm419_vm1, %v2671_v58, 0.0 }
 0x497   :  { %v464_v62 = vmul.f32 1.442695, %v450_v59  ;;  %475 = vadd.xlane.f32.xlu0 %v474_v60 }
 0x499   :  { %2231 = vpow2.f32 %v464_v62 }
 0x49a   :  { %2233 = vpow2.f32 %v458_v63 }
 0x49c   :  { %v443_v46 = vpop.xlane.xlu2 %442 }
 0x49d   :  { %v451_v3 = vsub.f32 %v418_v25, %v443_v46 }
 0x49e   :  { %v434_v51 = vpop.xlane.xlu1 %433 }
 0x49f   :  { %v2675_v0 = vpop.eup %2231  ;;  %v448_v1 = vsub.f32 %v415_v28, %v434_v51  ;;  %v466_v7 = vmul.f32 1.442695, %v451_v3 }
 0x4a0   :  { %v486_v2 = vsel %vm419_vm1, %v2675_v0, 0.0  ;;  %v2679_v6 = vpop.eup %2233 }
 0x4a1   :  { %v460_v4 = vmul.f32 1.442695, %v448_v1  ;;  %487 = vadd.xlane.f32.xlu1 %v486_v2  ;;  %v477_v12 = vsel %vm419_vm1, %v2679_v6, 0.0 }
 0x4a3   :  { %2235 = vpow2.f32 %v460_v4 }
 0x4a4   :  { %v2161_v5 = vpop.permute.xlu2 %2160  ;;  %2237 = vpow2.f32 %v466_v7 }
 0x4a5   :  { %v2162_v8 = vunpack.i.l.bf16 %v2161_v5  ;;  %v2163_v11 = vunpack.i.h.bf16 %v2161_v5 }
 0x4a6   :  { %v437_v9 = vpop.xlane.xlu1 %436 }
 0x4a7   :  { %v449_v10 = vsub.f32 %v416_v35, %v437_v9  ;;  %638 = vmatpush.msrb.mxu3 %v2162_v8  ;;  %v2169_v35 = vpack.i.bf16 %v2606_v53, %v2619_v55 }
 0x4a9   :  { %v2683_v13 = vpop.eup %2235  ;;  %v462_v14 = vmul.f32 1.442695, %v449_v10  ;;  %478 = vadd.xlane.f32.xlu1 %v477_v12  ;;  %639 = vmatpush.msrb.mxu3 %v2163_v11 }
 0x4aa   :  { %v480_v15 = vsel %vm419_vm1, %v2683_v13, 0.0  ;;  %v2687_v17 = vpop.eup %2237 }
 0x4ab   :  { %2239 = vpow2.f32 %v462_v14  ;;  %481 = vadd.xlane.f32.xlu0 %v480_v15  ;;  %v489_v20 = vsel %vm419_vm1, %v2687_v17, 0.0 }
 0x4ae   :  { %v470_v16 = vpop.xlane.xlu1 %469 }
 0x4af   :  { %2241 = vrcp.f32 %v470_v16  ;;  %v503_v24 = vand.u32 2147483648, %v470_v16  ;;  %v501_v27 = vand.u32 2147483647, %v470_v16  ;;  %vm497_vm4 = vweird.f32 %v470_v16 }
 0x4b1   :  { %v2689_v18 = vpop.eup %2239  ;;  %v504_v29 = vor.u32 1.1754944e-38, %v503_v24  ;;  %vm502_vm6 = vcmp.eq.f32.partialorder %v501_v27, 8.507059e+37 }
 0x4b2   :  { %v483_v19 = vsel %vm419_vm1, %v2689_v18, 0.0 }
 0x4b3   :  { %484 = vadd.xlane.f32.xlu1 %v483_v19  ;;  %490 = vadd.xlane.f32.xlu0 %v489_v20 }
 0x4b5   :  { %v2242_v21 = vpop.eup %2241 }
 0x4b6   :  { %v493_v22 = vmul.f32 %v2242_v21, %v470_v16  ;;  %vm498_vm3 = vweird.f32 %v2242_v21 }
 0x4b7   :  { %vm499_vm5 = vmor %vm497_vm4, %vm498_vm3 }
 0x4b8   :  { %v494_v23 = vsub.f32 1.0, %v493_v22 }
 0x4ba   :  { %v495_v25 = vmul.f32 %v2242_v21, %v494_v23 }
 0x4bc   :  { %v496_v28 = vadd.f32 %v2242_v21, %v495_v25 }
 0x4be   :  { %v500_v31 = vsel %vm499_vm5, %v2242_v21, %v496_v28 }
 0x4bf   :  { %v505_v32 = vsel %vm502_vm6, %v504_v29, %v500_v31 }
 0x4c0   :  { %v506_v33 = vmul.f32 %v2657_v37, %v505_v32 }
 0x4c2   :  { %2064 = vmatmul.msk.f32.vlgmr.msrb.gmra.mxu3 %vm419_vm1, %v506_v33 }
 0x4c7   :  { %2165 = vrot.lane.b32.xlu0 %v2164_v34, %s2364_s27 }
 0x4cc   :  { %2170 = vrot.lane.b32.xlu1 %v2169_v35, %s2364_s27 }
 0x4dd   :  { %v473_v36 = vpop.xlane.xlu2 %472 }
 0x4de   :  { %2243 = vrcp.f32 %v473_v36  ;;  %v518_v37 = vand.u32 2147483648, %v473_v36  ;;  %v516_v50 = vand.u32 2147483647, %v473_v36  ;;  %vm512_vm8 = vweird.f32 %v473_v36 }
 0x4e0   :  { %v519_v52 = vor.u32 1.1754944e-38, %v518_v37  ;;  %vm517_vm10 = vcmp.eq.f32.partialorder %v516_v50, 8.507059e+37 }
 0x4e4   :  { %v2244_v39 = vpop.eup %2243 }
 0x4e5   :  { %v508_v40 = vmul.f32 %v2244_v39, %v473_v36  ;;  %v2176_v42 = vpop.permute.xlu2 %2175  ;;  %vm513_vm7 = vweird.f32 %v2244_v39 }
 0x4e6   :  { %v2177_v41 = vunpack.i.l.bf16 %v2176_v42  ;;  %v2178_v45 = vunpack.i.h.bf16 %v2176_v42  ;;  %vm514_vm9 = vmor %vm512_vm8, %vm513_vm7 }
 0x4e7   :  { %v509_v43 = vsub.f32 1.0, %v508_v40 }
 0x4e8   :  { %673 = vmatpush.msrb.mxu1 %v2177_v41 }
 0x4e9   :  { %v510_v49 = vmul.f32 %v2244_v39, %v509_v43 }
 0x4ea   :  { %674 = vmatpush.msrb.mxu1 %v2178_v45 }
 0x4eb   :  { %v511_v54 = vadd.f32 %v2244_v39, %v510_v49 }
 0x4ed   :  { %v515_v53 = vsel %vm514_vm9, %v2244_v39, %v511_v54 }
 0x4ee   :  { %v520_v55 = vsel %vm517_vm10, %v519_v52, %v515_v53 }
 0x4ef   :  { %v521_v47 = vmul.f32 %v2664_v44, %v520_v55 }
 0x4f1   :  { %2065 = vmatmul.msk.f32.gmra.mxu3 %vm419_vm1, %v521_v47 }
 0x50a   :  { %v476_v48 = vpop.xlane.xlu0 %475 }
 0x50b   :  { %2245 = vrcp.f32 %v476_v48  ;;  %v533_v61 = vand.u32 2147483648, %v476_v48  ;;  %v531_v63 = vand.u32 2147483647, %v476_v48  ;;  %vm527_vm12 = vweird.f32 %v476_v48 }
 0x50d   :  { %v534_v51 = vor.u32 1.1754944e-38, %v533_v61  ;;  %vm532_vm14 = vcmp.eq.f32.partialorder %v531_v63, 8.507059e+37 }
 0x511   :  { %v2246_v56 = vpop.eup %2245 }
 0x512   :  { %v523_v57 = vmul.f32 %v2246_v56, %v476_v48  ;;  %vm528_vm11 = vweird.f32 %v2246_v56 }
 0x513   :  { %vm529_vm13 = vmor %vm527_vm12, %vm528_vm11 }
 0x514   :  { %v524_v59 = vsub.f32 1.0, %v523_v57  ;;  %v2705_v60 = vpop.xlane.xlu1 %487 }
 0x515   :  { %2247 = vrcp.f32 %v2705_v60  ;;  %v593_v36 = vand.u32 2147483648, %v2705_v60  ;;  %vm587_vm7 = vweird.f32 %v2705_v60  ;;  %v591_v39 = vand.u32 2147483647, %v2705_v60 }
 0x516   :  { %v525_v62 = vmul.f32 %v2246_v56, %v524_v59 }
 0x517   :  { %v594_v43 = vor.u32 1.1754944e-38, %v593_v36  ;;  %vm592_vm11 = vcmp.eq.f32.partialorder %v591_v39, 8.507059e+37  ;;  %v2201_v36 = vld [vmem:[%s3343_s6] ss:$0 sm:$0xff] }
 0x518   :  { %v526_v46 = vadd.f32 %v2246_v56, %v525_v62 }
 0x51a   :  { %v530_v1 = vsel %vm529_vm13, %v2246_v56, %v526_v46 }
 0x51b   :  { %v535_v44 = vsel %vm532_vm14, %v534_v51, %v530_v1  ;;  %v2248_v5 = vpop.eup %2247 }
 0x51c   :  { %v479_v2 = vpop.xlane.xlu1 %478  ;;  %v536_v3 = vmul.f32 %v2671_v58, %v535_v44  ;;  %v583_v10 = vmul.f32 %v2248_v5, %v2705_v60  ;;  %vm588_vm6 = vweird.f32 %v2248_v5 }
 0x51d   :  { %2249 = vrcp.f32 %v479_v2  ;;  %v548_v15 = vand.u32 2147483648, %v479_v2  ;;  %v546_v58 = vand.u32 2147483647, %v479_v2  ;;  %vm542_vm3 = vweird.f32 %v479_v2  ;;  %vm589_vm8 = vmor %vm587_vm7, %vm588_vm6 }
 0x51e   :  { %v482_v4 = vpop.xlane.xlu0 %481  ;;  %2066 = vmatmul.msk.f32.vlgmr.msrb.gmra.mxu1 %vm419_vm1, %v536_v3  ;;  %v584_v20 = vsub.f32 1.0, %v583_v10 }
 0x51f   :  { %2251 = vrcp.f32 %v482_v4  ;;  %v549_v22 = vor.u32 1.1754944e-38, %v548_v15  ;;  %vm547_vm5 = vcmp.eq.f32.partialorder %v546_v58, 8.507059e+37  ;;  %vm557_vm10 = vweird.f32 %v482_v4  ;;  %v786_v58 = vld [vmem:[%s3342_s5 + $0x18] sm:$0xff] }
 0x520   :  { %v585_v28 = vmul.f32 %v2248_v5, %v584_v20  ;;  %v563_v37 = vand.u32 2147483648, %v482_v4  ;;  %v561_v45 = vand.u32 2147483647, %v482_v4  ;;  %809 = vmatpush.msrb.mxu0 %v786_v58  ;;  %v784_v20 = vld [vmem:[%s3342_s5 + $0x8] sm:$0xff] }
 0x522   :  { %v586_v33 = vadd.f32 %v2248_v5, %v585_v28  ;;  %v564_v48 = vor.u32 1.1754944e-38, %v563_v37  ;;  %vm562_vm13 = vcmp.eq.f32.partialorder %v561_v45, 8.507059e+37 }
 0x523   :  { %v2250_v7 = vpop.eup %2249 }
 0x524   :  { %v538_v8 = vmul.f32 %v2250_v7, %v479_v2  ;;  %vm543_vm15 = vweird.f32 %v2250_v7  ;;  %v590_v40 = vsel %vm589_vm8, %v2248_v5, %v586_v33 }
 0x525   :  { %v2252_v9 = vpop.eup %2251  ;;  %vm544_vm4 = vmor %vm542_vm3, %vm543_vm15  ;;  %v595_v49 = vsel %vm592_vm11, %v594_v43, %v590_v40 }
 0x526   :  { %v539_v11 = vsub.f32 1.0, %v538_v8  ;;  %v2711_v12 = vpop.xlane.xlu1 %484  ;;  %v2713_v14 = vpop.xlane.xlu0 %490  ;;  %v553_v19 = vmul.f32 %v2252_v9, %v482_v4  ;;  %vm558_vm9 = vweird.f32 %v2252_v9  ;;  %v596_v57 = vmul.f32 %v2675_v0, %v595_v49 }
 0x527   :  { %2253 = vrcp.f32 %v2711_v12  ;;  %vm559_vm12 = vmor %vm557_vm10, %vm558_vm9  ;;  %vm572_vm15 = vweird.f32 %v2711_v12  ;;  %v578_v62 = vand.u32 2147483648, %v2711_v12  ;;  %v608_v63 = vand.u32 2147483648, %v2713_v14 }
 0x528   :  { %v540_v16 = vmul.f32 %v2250_v7, %v539_v11  ;;  %2255 = vrcp.f32 %v2713_v14  ;;  %v554_v24 = vsub.f32 1.0, %v553_v19  ;;  %v576_v1 = vand.u32 2147483647, %v2711_v12  ;;  %v785_v19 = vld [vmem:[%s3342_s5 + $0x10] sm:$0xff] }
 0x529   :  { %v606_v44 = vand.u32 2147483647, %v2713_v14  ;;  %v579_v4 = vor.u32 1.1754944e-38, %v578_v62  ;;  %v609_v5 = vor.u32 1.1754944e-38, %v608_v63  ;;  %810 = vmatpush.msrb.mxu0 %v785_v19  ;;  %vm780_vm9 = vcmask 195584   ;;  %v977_v19 = vld [vmem:[%s3346_s9 + $0x60] sm:$0xff] }
 0x52a   :  { %v541_v21 = vadd.f32 %v2250_v7, %v540_v16  ;;  %v555_v32 = vmul.f32 %v2252_v9, %v554_v24  ;;  %vm577_vm7 = vcmp.eq.f32.partialorder %v576_v1, 8.507059e+37 }
 0x52b   :  { %vm607_vm8 = vcmp.eq.f32.partialorder %v606_v44, 8.507059e+37  ;;  %811 = vmatpush.msrb.mxu0 %v784_v20 }
 0x52c   :  { %v545_v23 = vsel %vm544_vm4, %v2250_v7, %v541_v21  ;;  %vm602_vm4 = vweird.f32 %v2713_v14  ;;  %v783_v21 = vld [vmem:[%s3342_s5] sm:$0xff] }
 0x52d   :  { %v550_v25 = vsel %vm547_vm5, %v549_v22, %v545_v23  ;;  %v2717_v27 = vpop.eup %2253  ;;  %812 = vmatpush.msrb.mxu0 %v783_v21 }
 0x52e   :  { %v551_v29 = vmul.f32 %v2679_v6, %v550_v25  ;;  %v2720_v31 = vpop.eup %2255  ;;  %v568_v34 = vmul.f32 %v2717_v27, %v2711_v12  ;;  %v556_v6 = vadd.f32 %v2252_v9, %v555_v32  ;;  %vm573_vm14 = vweird.f32 %v2717_v27 }
 0x52f   :  { %v598_v35 = vmul.f32 %v2720_v31, %v2713_v14  ;;  %vm603_vm3 = vweird.f32 %v2720_v31  ;;  %vm574_vm5 = vmor %vm572_vm15, %vm573_vm14 }
 0x530   :  { %2067 = vmatmul.msk.f32.gmra.mxu1 %vm419_vm1, %v551_v29  ;;  %v569_v42 = vsub.f32 1.0, %v568_v34  ;;  %v560_v50 = vsel %vm559_vm12, %v2252_v9, %v556_v6  ;;  %vm604_vm6 = vmor %vm602_vm4, %vm603_vm3 }
 0x531   :  { %v599_v41 = vsub.f32 1.0, %v598_v35  ;;  %v565_v56 = vsel %vm562_vm13, %v564_v48, %v560_v50 }
 0x532   :  { %v570_v52 = vmul.f32 %v2717_v27, %v569_v42  ;;  %v566_v0 = vmul.f32 %v2683_v13, %v565_v56  ;;  %v913_v56 = vld [vmem:[%s3344_s7 + $0x18] sm:$0xff] }
 0x533   :  { %v600_v53 = vmul.f32 %v2720_v31, %v599_v41  ;;  %936 = vmatpush.msra.mxu1 %v913_v56 }
 0x534   :  { %v571_v60 = vadd.f32 %v2717_v27, %v570_v52 }
 0x535   :  { %v601_v61 = vadd.f32 %v2720_v31, %v600_v53 }
 0x536   :  { %v575_v2 = vsel %vm574_vm5, %v2717_v27, %v571_v60  ;;  %v910_v60 = vld [vmem:[%s3344_s7] sm:$0xff] }
 0x537   :  { %v605_v3 = vsel %vm604_vm6, %v2720_v31, %v601_v61  ;;  %v580_v13 = vsel %vm577_vm7, %v579_v4, %v575_v2 }
 0x538   :  { %v610_v7 = vsel %vm607_vm8, %v609_v5, %v605_v3  ;;  %v581_v8 = vmul.f32 %v2689_v18, %v580_v13 }
 0x539   :  { %v2166_v54 = vpop.permute.xlu0 %2165  ;;  %v611_v9 = vmul.f32 %v2687_v17, %v610_v7 }
 0x53a   :  { %v2168_v55 = vunpack.i.h.bf16 %v2166_v54  ;;  %v2167_v47 = vunpack.i.l.bf16 %v2166_v54 }
 0x53c   :  { %708 = vmatpush.msra.mxu2 %v2167_v47  ;;  %743 = vmatpush.msra.mxu3 %v2168_v55 }
 0x53e   :  { %v2171_v59 = vpop.permute.xlu1 %2170 }
 0x53f   :  { %v2173_v46 = vunpack.i.h.bf16 %v2171_v59  ;;  %v2172_v51 = vunpack.i.l.bf16 %v2171_v59  ;;  %v911_v59 = vld [vmem:[%s3344_s7 + $0x8] sm:$0xff] }
 0x541   :  { %709 = vmatpush.msra.mxu2 %v2172_v51  ;;  %744 = vmatpush.msra.mxu3 %v2173_v46 }
 0x542   :  { %2068 = vmatmul.msk.f32.vlgmr.msra.gmra.mxu2 %vm419_vm1, %v566_v0  ;;  %2070 = vmatmul.msk.f32.vlgmr.msra.gmra.mxu3 %vm419_vm1, %v596_v57  ;;  %v912_v57 = vld [vmem:[%s3344_s7 + $0x10] sm:$0xff] }
 0x543   :  { %937 = vmatpush.msra.mxu1 %v912_v57 }
 0x545   :  { %v641_v12 = vpop.f32.mrf.mxu3  ;;  %938 = vmatpush.msra.mxu1 %v911_v59  ;;  %v976_v59 = vld [vmem:[%s3346_s9 + $0x58] sm:$0xff] }
 0x547   :  { %939 = vmatpush.msra.mxu1 %v910_v60  ;;  %v975_v60 = vld [vmem:[%s3346_s9 + $0x50] sm:$0xff] }
 0x54a   :  { %2069 = vmatmul.msk.f32.gmra.mxu2 %vm419_vm1, %v581_v8  ;;  %2071 = vmatmul.msk.f32.gmra.mxu3 %vm419_vm1, %v611_v9 }
 0x574   :  { %v644_v14 = vpop.f32.mrf.mxu3 }
 0x59b   :  { %v676_v10 = vpop.f32.mrf.mxu1 }
 0x59c   :  { %754 = vrot.lane.b32.xlu2 %v676_v10, %s3362_s28 }
 0x5ad   :  { %v679_v11 = vpop.f32.mrf.mxu1 }
 0x5ae   :  { %756 = vrot.lane.b32.xlu1 %v679_v11, %s3362_s28  ;;  %s3371_s28 = sld [smem:[#allocation8_spill]] }
 0x5c5   :  { %v711_v15 = vpop.f32.mrf.mxu2  ;;  %v746_v16 = vpop.f32.mrf.mxu3 }
 0x5c6   :  { %762 = vrot.lane.b32.xlu0 %v711_v15, %s3360_s30  ;;  %770 = vrot.lane.b32.xlu2 %v746_v16, %s2367_s0  ;;  %v980_v15 = vld [vmem:[%s3346_s9 + $0x78] sm:$0xff]  ;;  %v979_v16 = vld [vmem:[%s3346_s9 + $0x70] sm:$0xff] }
 0x5c7   :  { %985 = vmatpush.msrb.mxu2 %v980_v15 }
 0x5c9   :  { %986 = vmatpush.msrb.mxu2 %v979_v16 }
 0x5cd   :  { %v714_v17 = vpop.f32.mrf.mxu2  ;;  %v749_v18 = vpop.f32.mrf.mxu3 }
 0x5ce   :  { %764 = vrot.lane.b32.xlu0 %v714_v17, %s3360_s30  ;;  %772 = vrot.lane.b32.xlu2 %v749_v18, %s2367_s0  ;;  %v978_v18 = vld [vmem:[%s3346_s9 + $0x68] sm:$0xff] }
 0x5cf   :  { %987 = vmatpush.msrb.mxu2 %v978_v18 }
 0x5d1   :  { %988 = vmatpush.msrb.mxu2 %v977_v19 }
 0x5d3   :  { %989 = vmatpush.msrb.mxu2 %v976_v59 }
 0x5d5   :  { %990 = vmatpush.msrb.mxu2 %v975_v60 }
 0x5f6   :  { %v755_v22 = vpop.permute.xlu2 %754 }
 0x5f7   :  { %v776_v24 = vsel %vm266_vm0, %v641_v12, %v755_v22 }
 0x620   :  { %v771_v23 = vpop.permute.xlu2 %770  ;;  %v757_v29 = vpop.permute.xlu1 %756 }
 0x621   :  { %v777_v31 = vsel %vm266_vm0, %v644_v14, %v757_v29 }
 0x628   :  { %v773_v33 = vpop.permute.xlu2 %772 }
 0x638   :  { %v763_v25 = vpop.permute.xlu0 %762 }
 0x639   :  { %v778_v27 = vsel %vm419_vm1, %v776_v24, %v763_v25 }
 0x63a   :  { %v781_v28 = vsel %vm780_vm9, %v778_v27, %v771_v23 }
 0x63b   :  { %2072 = vmatmul.msk.f32.vlgmr.msrb.gmra.mxu0 %vm121_vm2, %v781_v28 }
 0x640   :  { %v765_v32 = vpop.permute.xlu0 %764 }
 0x641   :  { %v779_v34 = vsel %vm419_vm1, %v777_v31, %v765_v32 }
 0x642   :  { %v782_v35 = vsel %vm780_vm9, %v779_v34, %v773_v33 }
 0x643   :  { %2073 = vmatmul.msk.f32.gmra.mxu0 %vm121_vm2, %v782_v35 }
 0x6b8   :  { %v814_v39 = vpop.f32.mrf.mxu0 }
 0x6b9   :  { %v815_v6 = vadd.f32 %v2201_v36, %v814_v39 }
 0x6bb   :  { %v2782_v40 = vadd.f32 %v815_v6, %v2522_v26 }
 0x6bd   :  { %v824_v42 = vsel %vm121_vm2, %v2782_v40, 0.0 }
 0x6be   :  { %825 = vadd.xlane.f32.xlu1 %v824_v42 }
 0x6c0   :  { %v817_v41 = vpop.f32.mrf.mxu0 }
 0x6c1   :  { %v818_v43 = vadd.f32 %v2201_v36, %v817_v41  ;;  %v2202_v36 = vld [vmem:[%s3350_s13] ss:$0 sm:$0xff] }
 0x6c2   :  { %v2203_v41 = vld [vmem:[%s3351_s14] ss:$0 sm:$0xff] }
 0x6c3   :  { %v2787_v37 = vadd.f32 %v818_v43, %v2529_v30 }
 0x6c5   :  { %v827_v45 = vsel %vm121_vm2, %v2787_v37, 0.0 }
 0x6c6   :  { %828 = vadd.xlane.f32.xlu0 %v827_v45 }
 0x731   :  { %v826_v49 = vpop.xlane.xlu1 %825 }
 0x732   :  { %v830_v50 = vmul.f32 %v826_v49, %v2533_v38 }
 0x734   :  { %v2793_v54 = vsub.f32 %v2782_v40, %v830_v50 }
 0x736   :  { %v834_v26 = vmul.f32 %v2793_v54, %v2793_v54 }
 0x738   :  { %v836_v52 = vsel %vm121_vm2, %v834_v26, 0.0 }
 0x739   :  { %837 = vadd.xlane.f32.xlu2 %v836_v52  ;;  %v829_v53 = vpop.xlane.xlu0 %828 }
 0x73a   :  { %v831_v30 = vmul.f32 %v829_v53, %v2533_v38 }
 0x73c   :  { %v2800_v55 = vsub.f32 %v2787_v37, %v831_v30 }
 0x73e   :  { %v835_v47 = vmul.f32 %v2800_v55, %v2800_v55 }
 0x740   :  { %v839_v48 = vsel %vm121_vm2, %v835_v47, 0.0 }
 0x741   :  { %840 = vadd.xlane.f32.xlu1 %v839_v48 }
 0x7ac   :  { %v838_v61 = vpop.xlane.xlu2 %837 }
 0x7ad   :  { %v842_v62 = vmul.f32 %v838_v61, %v2533_v38  ;;  %v974_v61 = vld [vmem:[%s3346_s9 + $0x48] sm:$0xff] }
 0x7ae   :  { %991 = vmatpush.msrb.mxu2 %v974_v61 }
 0x7af   :  { %v844_v63 = vadd.f32 1e-05, %v842_v62  ;;  %v972_v62 = vld [vmem:[%s3346_s9 + $0x38] sm:$0xff] }
 0x7b1   :  { %2257 = vrsqrt.f32 %v844_v63  ;;  %vm853_vm10 = vcmp.eq.f32.partialorder %v844_v63, inf  ;;  %v856_v10 = vand.u32 2147483648, %v844_v63  ;;  %vm855_vm11 = vcmp.eq.f32.partialorder %v844_v63, 0.0 }
 0x7b4   :  { %v841_v46 = vpop.xlane.xlu1 %840 }
 0x7b5   :  { %v843_v51 = vmul.f32 %v841_v46, %v2533_v38  ;;  %v970_v46 = vld [vmem:[%s3346_s9 + $0x28] sm:$0xff] }
 0x7b7   :  { %v2258_v0 = vpop.eup %2257  ;;  %v845_v1 = vadd.f32 1e-05, %v843_v51  ;;  %v969_v51 = vld [vmem:[%s3346_s9 + $0x20] sm:$0xff] }
 0x7b8   :  { %v847_v44 = vmul.f32 %v2258_v0, %v844_v63 }
 0x7b9   :  { %2259 = vrsqrt.f32 %v845_v1  ;;  %vm865_vm12 = vcmp.eq.f32.partialorder %v845_v1, inf  ;;  %v868_v21 = vand.u32 2147483648, %v845_v1  ;;  %vm867_vm13 = vcmp.eq.f32.partialorder %v845_v1, 0.0 }
 0x7ba   :  { %v848_v2 = vmul.f32 %v2258_v0, %v847_v44  ;;  %v966_v44 = vld [vmem:[%s3346_s9 + $0x8] sm:$0xff] }
 0x7bc   :  { %v849_v3 = vmul.f32 0.5, %v848_v2  ;;  %v965_v2 = vld [vmem:[%s3346_s9] sm:$0xff] }
 0x7be   :  { %v850_v4 = vsub.f32 1.5, %v849_v3  ;;  %v2204_v3 = vld [vmem:[%s3345_s8] ss:$0 sm:$0xff] }
 0x7bf   :  { %v2260_v5 = vpop.eup %2259 }
 0x7c0   :  { %v851_v13 = vmul.f32 %v2258_v0, %v850_v4  ;;  %v859_v7 = vmul.f32 %v2260_v5, %v845_v1  ;;  %v968_v0 = vld [vmem:[%s3346_s9 + $0x18] sm:$0xff] }
 0x7c2   :  { %v852_v8 = vmul.f32 %v851_v13, %v844_v63  ;;  %v860_v9 = vmul.f32 %v2260_v5, %v859_v7 }
 0x7c4   :  { %v854_v11 = vsel %vm853_vm10, %v844_v63, %v852_v8  ;;  %v861_v12 = vmul.f32 0.5, %v860_v9  ;;  %v971_v63 = vld [vmem:[%s3346_s9 + $0x30] sm:$0xff] }
 0x7c5   :  { %v857_v14 = vsel %vm855_vm11, %v856_v10, %v854_v11 }
 0x7c6   :  { %v862_v17 = vsub.f32 1.5, %v861_v12  ;;  %2261 = vrcp.f32 %v857_v14  ;;  %v881_v28 = vand.u32 2147483648, %v857_v14  ;;  %v879_v31 = vand.u32 2147483647, %v857_v14 }
 0x7c7   :  { %vm875_vm15 = vweird.f32 %v857_v14 }
 0x7c8   :  { %v863_v58 = vmul.f32 %v2260_v5, %v862_v17  ;;  %v882_v34 = vor.u32 1.1754944e-38, %v881_v28  ;;  %vm880_vm4 = vcmp.eq.f32.partialorder %v879_v31, 8.507059e+37 }
 0x7ca   :  { %v864_v20 = vmul.f32 %v863_v58, %v845_v1 }
 0x7cc   :  { %v2262_v22 = vpop.eup %2261  ;;  %v866_v23 = vsel %vm865_vm12, %v845_v1, %v864_v20  ;;  %v967_v1 = vld [vmem:[%s3346_s9 + $0x10] sm:$0xff] }
 0x7cd   :  { %v871_v24 = vmul.f32 %v2262_v22, %v857_v14  ;;  %v869_v25 = vsel %vm867_vm13, %v868_v21, %v866_v23  ;;  %vm876_vm14 = vweird.f32 %v2262_v22 }
 0x7ce   :  { %2263 = vrcp.f32 %v869_v25  ;;  %vm877_vm3 = vmor %vm875_vm15, %vm876_vm14  ;;  %v896_v45 = vand.u32 2147483648, %v869_v25  ;;  %v894_v26 = vand.u32 2147483647, %v869_v25  ;;  %vm890_vm6 = vweird.f32 %v869_v25 }
 0x7cf   :  { %v872_v27 = vsub.f32 1.0, %v871_v24 }
 0x7d0   :  { %v897_v30 = vor.u32 1.1754944e-38, %v896_v45  ;;  %vm895_vm8 = vcmp.eq.f32.partialorder %v894_v26, 8.507059e+37  ;;  %v2081_v26 = vld [vmem:[%s3341_s4 + $0x38] sm:$0xff] }
 0x7d1   :  { %v873_v29 = vmul.f32 %v2262_v22, %v872_v27  ;;  %v2205_v27 = vld [vmem:[%s3371_s28] ss:$0 sm:$0xff]  ;;  %1123 = vmatpush.msrb.mxu3 %v2081_v26 }
 0x7d3   :  { %v874_v32 = vadd.f32 %v2262_v22, %v873_v29 }
 0x7d4   :  { %v2264_v33 = vpop.eup %2263 }
 0x7d5   :  { %v878_v35 = vsel %vm877_vm3, %v2262_v22, %v874_v32  ;;  %v886_v39 = vmul.f32 %v2264_v33, %v869_v25  ;;  %vm891_vm5 = vweird.f32 %v2264_v33 }
 0x7d6   :  { %v883_v6 = vsel %vm880_vm4, %v882_v34, %v878_v35  ;;  %vm892_vm7 = vmor %vm890_vm6, %vm891_vm5 }
 0x7d7   :  { %v884_v42 = vmul.f32 %v883_v6, %v2793_v54  ;;  %v887_v43 = vsub.f32 1.0, %v886_v39 }
 0x7d9   :  { %v903_v49 = vmul.f32 %v2202_v36, %v884_v42  ;;  %v888_v50 = vmul.f32 %v2264_v33, %v887_v43 }
 0x7db   :  { %v908_v52 = vadd.f32 %v2203_v41, %v903_v49  ;;  %v889_v53 = vadd.f32 %v2264_v33, %v888_v50 }
 0x7dd   :  { %2074 = vmatmul.msk.f32.vlgmr.msra.gmra.mxu1 %vm121_vm2, %v908_v52  ;;  %v893_v47 = vsel %vm892_vm7, %v2264_v33, %v889_v53  ;;  %v2080_v52 = vld [vmem:[%s3341_s4 + $0x30] sm:$0xff]  ;;  %v2079_v53 = vld [vmem:[%s3341_s4 + $0x28] sm:$0xff] }
 0x7de   :  { %v898_v54 = vsel %vm895_vm8, %v897_v30, %v893_v47  ;;  %1124 = vmatpush.msrb.mxu3 %v2080_v52  ;;  %v2078_v30 = vld [vmem:[%s3341_s4 + $0x20] sm:$0xff] }
 0x7df   :  { %v899_v48 = vmul.f32 %v898_v54, %v2800_v55  ;;  %v973_v55 = vld [vmem:[%s3346_s9 + $0x40] sm:$0xff] }
 0x7e0   :  { %992 = vmatpush.msrb.mxu2 %v973_v55  ;;  %1125 = vmatpush.msrb.mxu3 %v2079_v53 }
 0x7e1   :  { %v904_v56 = vmul.f32 %v2202_v36, %v899_v48 }
 0x7e2   :  { %993 = vmatpush.msrb.mxu2 %v972_v62  ;;  %1126 = vmatpush.msrb.mxu3 %v2078_v30 }
 0x7e3   :  { %v909_v57 = vadd.f32 %v2203_v41, %v904_v56 }
 0x7e4   :  { %994 = vmatpush.msrb.mxu2 %v971_v63 }
 0x7e5   :  { %2075 = vmatmul.msk.f32.gmra.mxu1 %vm121_vm2, %v909_v57 }
 0x7e6   :  { %995 = vmatpush.msrb.mxu2 %v970_v46 }
 0x7e8   :  { %996 = vmatpush.msrb.mxu2 %v969_v51 }
 0x7ea   :  { %997 = vmatpush.msrb.mxu2 %v968_v0 }
 0x7ec   :  { %998 = vmatpush.msrb.mxu2 %v967_v1 }
 0x7ee   :  { %999 = vmatpush.msrb.mxu2 %v966_v44 }
 0x7f0   :  { %1000 = vmatpush.msrb.mxu2 %v965_v2 }
 0x85a   :  { %v941_v4 = vpop.f32.mrf.mxu1 }
 0x85b   :  { %v942_v5 = vadd.f32 %v2204_v3, %v941_v4 }
 0x85d   :  { %v949_v13 = vmul.f32 0.044715, %v942_v5  ;;  %v947_v19 = vmul.f32 0.5, %v942_v5 }
 0x85f   :  { %v951_v7 = vmul.f32 %v949_v13, %v942_v5 }
 0x861   :  { %v953_v8 = vmul.f32 %v951_v7, %v942_v5 }
 0x862   :  { %v944_v9 = vpop.f32.mrf.mxu1 }
 0x863   :  { %v945_v10 = vadd.f32 %v2204_v3, %v944_v9  ;;  %v955_v11 = vadd.f32 %v953_v8, %v942_v5 }
 0x865   :  { %v957_v12 = vmul.f32 0.7978846, %v955_v11  ;;  %v950_v14 = vmul.f32 0.044715, %v945_v10  ;;  %v948_v23 = vmul.f32 0.5, %v945_v10 }
 0x867   :  { %2265 = vtanh.f32 %v957_v12  ;;  %v952_v15 = vmul.f32 %v950_v14, %v945_v10 }
 0x869   :  { %v954_v16 = vmul.f32 %v952_v15, %v945_v10 }
 0x86b   :  { %v956_v17 = vadd.f32 %v954_v16, %v945_v10 }
 0x86d   :  { %v2266_v18 = vpop.eup %2265  ;;  %v958_v58 = vmul.f32 0.7978846, %v956_v17 }
 0x86e   :  { %v961_v20 = vadd.f32 1.0, %v2266_v18 }
 0x86f   :  { %2267 = vtanh.f32 %v958_v58 }
 0x870   :  { %v963_v21 = vmul.f32 %v961_v20, %v947_v19 }
 0x872   :  { %1001 = vmatmul.f32.vlgmr.msrb.gmra.mxu2 %v963_v21 }
 0x875   :  { %v2268_v22 = vpop.eup %2267 }
 0x876   :  { %v962_v24 = vadd.f32 1.0, %v2268_v22  ;;  %v2206_v22 = vld [vmem:[%s3348_s11 + $0x1] ss:$0 sm:$0xff] }
 0x878   :  { %v964_v25 = vmul.f32 %v962_v24, %v948_v23 }
 0x87a   :  { %1004 = vmatmul.f32.gmra.mxu2 %v964_v25 }
 0x8f5   :  { %v1002_v28 = vpop.f32.mrf.mxu2 }
 0x8f6   :  { %v1003_v29 = vadd.f32 %v2205_v27, %v1002_v28 }
 0x8f8   :  { %v2884_v31 = vadd.f32 %v1003_v29, %v2782_v40 }
 0x8fa   :  { %v1014_v32 = vsel %vm121_vm2, %v2884_v31, 0.0 }
 0x8fb   :  { %1015 = vadd.xlane.f32.xlu0 %v1014_v32 }
 0x8fd   :  { %v1005_v33 = vpop.f32.mrf.mxu2 }
 0x8fe   :  { %v1006_v34 = vadd.f32 %v2205_v27, %v1005_v33  ;;  %v2207_v27 = vld [vmem:[%s3349_s12 + $0x1] ss:$0 sm:$0xff] }
 0x900   :  { %v2889_v35 = vadd.f32 %v1006_v34, %v2787_v37 }
 0x902   :  { %v1017_v36 = vsel %vm121_vm2, %v2889_v35, 0.0 }
 0x903   :  { %1018 = vadd.xlane.f32.xlu2 %v1017_v36 }
 0x96e   :  { %v1016_v39 = vpop.xlane.xlu0 %1015 }
 0x96f   :  { %v1020_v6 = vmul.f32 %v1016_v39, %v2533_v38 }
 0x971   :  { %v2895_v42 = vsub.f32 %v2884_v31, %v1020_v6 }
 0x973   :  { %v1024_v40 = vmul.f32 %v2895_v42, %v2895_v42 }
 0x975   :  { %v1026_v41 = vsel %vm121_vm2, %v1024_v40, 0.0 }
 0x976   :  { %v1019_v43 = vpop.xlane.xlu2 %1018  ;;  %1027 = vadd.xlane.f32.xlu1 %v1026_v41 }
 0x977   :  { %v1021_v37 = vmul.f32 %v1019_v43, %v2533_v38 }
 0x979   :  { %v2902_v45 = vsub.f32 %v2889_v35, %v1021_v37 }
 0x97b   :  { %v1025_v49 = vmul.f32 %v2902_v45, %v2902_v45 }
 0x97d   :  { %v1029_v50 = vsel %vm121_vm2, %v1025_v49, 0.0 }
 0x97e   :  { %1030 = vadd.xlane.f32.xlu0 %v1029_v50 }
 0x9e9   :  { %v1028_v47 = vpop.xlane.xlu1 %1027 }
 0x9ea   :  { %v1032_v54 = vmul.f32 %v1028_v47, %v2533_v38 }
 0x9ec   :  { %v1034_v48 = vadd.f32 1e-05, %v1032_v54 }
 0x9ee   :  { %2269 = vrsqrt.f32 %v1034_v48  ;;  %vm1043_vm10 = vcmp.eq.f32.partialorder %v1034_v48, inf  ;;  %v1046_v2 = vand.u32 2147483648, %v1034_v48  ;;  %vm1045_vm11 = vcmp.eq.f32.partialorder %v1034_v48, 0.0 }
 0x9f1   :  { %v1031_v56 = vpop.xlane.xlu0 %1030 }
 0x9f2   :  { %v1033_v57 = vmul.f32 %v1031_v56, %v2533_v38 }
 0x9f4   :  { %v2270_v59 = vpop.eup %2269  ;;  %v1035_v60 = vadd.f32 1e-05, %v1033_v57 }
 0x9f5   :  { %v1037_v61 = vmul.f32 %v2270_v59, %v1034_v48 }
 0x9f6   :  { %2271 = vrsqrt.f32 %v1035_v60  ;;  %vm1055_vm12 = vcmp.eq.f32.partialorder %v1035_v60, inf  ;;  %v1058_v9 = vand.u32 2147483648, %v1035_v60  ;;  %vm1057_vm13 = vcmp.eq.f32.partialorder %v1035_v60, 0.0 }
 0x9f7   :  { %v1038_v55 = vmul.f32 %v2270_v59, %v1037_v61 }
 0x9f9   :  { %v1039_v62 = vmul.f32 0.5, %v1038_v55 }
 0x9fb   :  { %v1040_v63 = vsub.f32 1.5, %v1039_v62 }
 0x9fc   :  { %v2272_v46 = vpop.eup %2271 }
 0x9fd   :  { %v1041_v51 = vmul.f32 %v2270_v59, %v1040_v63  ;;  %v1049_v0 = vmul.f32 %v2272_v46, %v1035_v60 }
 0x9ff   :  { %v1042_v1 = vmul.f32 %v1041_v51, %v1034_v48  ;;  %v1050_v44 = vmul.f32 %v2272_v46, %v1049_v0  ;;  %v2329_v51 = vld [vmem:[%s3340_s3] sm:$0xff] }
 0xa01   :  { %v1044_v3 = vsel %vm1043_vm10, %v1034_v48, %v1042_v1  ;;  %v1051_v4 = vmul.f32 0.5, %v1050_v44 }
 0xa02   :  { %v1047_v5 = vsel %vm1045_vm11, %v1046_v2, %v1044_v3  ;;  %v2330_v3 = vld [vmem:[%s3340_s3 + $0x8] sm:$0xff]  ;;  %s3382_s3 = smov 8  }
 0xa03   :  { %v1052_v13 = vsub.f32 1.5, %v1051_v4  ;;  %2273 = vrcp.f32 %v1047_v5  ;;  %v1071_v16 = vand.u32 2147483648, %v1047_v5  ;;  %v1069_v18 = vand.u32 2147483647, %v1047_v5 }
 0xa04   :  { %vm1065_vm15 = vweird.f32 %v1047_v5 }
 0xa05   :  { %v1053_v7 = vmul.f32 %v2272_v46, %v1052_v13  ;;  %v1072_v20 = vor.u32 1.1754944e-38, %v1071_v16  ;;  %vm1070_vm4 = vcmp.eq.f32.partialorder %v1069_v18, 8.507059e+37 }
 0xa07   :  { %v1054_v8 = vmul.f32 %v1053_v7, %v1035_v60 }
 0xa09   :  { %v2274_v10 = vpop.eup %2273  ;;  %v1056_v11 = vsel %vm1055_vm12, %v1035_v60, %v1054_v8 }
 0xa0a   :  { %v1061_v12 = vmul.f32 %v2274_v10, %v1047_v5  ;;  %v1059_v14 = vsel %vm1057_vm13, %v1058_v9, %v1056_v11  ;;  %vm1066_vm14 = vweird.f32 %v2274_v10 }
 0xa0b   :  { %2275 = vrcp.f32 %v1059_v14  ;;  %vm1067_vm3 = vmor %vm1065_vm15, %vm1066_vm14  ;;  %v1086_v29 = vand.u32 2147483648, %v1059_v14  ;;  %v1084_v34 = vand.u32 2147483647, %v1059_v14  ;;  %vm1080_vm6 = vweird.f32 %v1059_v14 }
 0xa0c   :  { %v1062_v15 = vsub.f32 1.0, %v1061_v12 }
 0xa0d   :  { %v1087_v6 = vor.u32 1.1754944e-38, %v1086_v29  ;;  %vm1085_vm8 = vcmp.eq.f32.partialorder %v1084_v34, 8.507059e+37 }
 0xa0e   :  { %v1063_v17 = vmul.f32 %v2274_v10, %v1062_v15 }
 0xa10   :  { %v1064_v58 = vadd.f32 %v2274_v10, %v1063_v17 }
 0xa11   :  { %v2276_v19 = vpop.eup %2275 }
 0xa12   :  { %v1068_v21 = vsel %vm1067_vm3, %v2274_v10, %v1064_v58  ;;  %v1076_v23 = vmul.f32 %v2276_v19, %v1059_v14  ;;  %vm1081_vm5 = vweird.f32 %v2276_v19 }
 0xa13   :  { %v1073_v24 = vsel %vm1070_vm4, %v1072_v20, %v1068_v21  ;;  %vm1082_vm7 = vmor %vm1080_vm6, %vm1081_vm5 }
 0xa14   :  { %v1074_v25 = vmul.f32 %v1073_v24, %v2895_v42  ;;  %v1077_v28 = vsub.f32 1.0, %v1076_v23 }
 0xa16   :  { %v1093_v32 = vmul.f32 %v2206_v22, %v1074_v25  ;;  %v1078_v33 = vmul.f32 %v2276_v19, %v1077_v28 }
 0xa18   :  { %v1098_v36 = vadd.f32 %v2207_v27, %v1093_v32  ;;  %v1079_v39 = vadd.f32 %v2276_v19, %v1078_v33 }
 0xa1a   :  { %2082 = vmatmul.msk.f32.vlgmr.msrb.gmra.mxu3 %vm121_vm2, %v1098_v36  ;;  %v1083_v40 = vsel %vm1082_vm7, %v2276_v19, %v1079_v39 }
 0xa1b   :  { %v1088_v42 = vsel %vm1085_vm8, %v1087_v6, %v1083_v40 }
 0xa1c   :  { %v1089_v41 = vmul.f32 %v1088_v42, %v2902_v45 }
 0xa1e   :  { %v1094_v43 = vmul.f32 %v2206_v22, %v1089_v41 }
 0xa20   :  { %v1099_v37 = vadd.f32 %v2207_v27, %v1094_v43 }
 0xa22   :  { %2083 = vmatmul.msk.f32.gmra.mxu3 %vm121_vm2, %v1099_v37 }
 0xa9d   :  { %v2931_v49 = vpop.f32.mrf.mxu3 }
 0xa9e   :  { %1140 = vrot.lane.b32.xlu1 %v2931_v49, %s2363_s2 }
 0xaa5   :  { %v2935_v50 = vpop.f32.mrf.mxu3 }
 0xaa6   :  { %1144 = vrot.lane.b32.xlu1 %v2931_v49, %s2362_s10  ;;  %1138 = vrot.lane.b32.xlu0 %v2935_v50, %s2360_s21 }
 0xaa7   :  { %1142 = vrot.lane.b32.xlu2 %v2935_v50, %s2363_s2 }
 0xaae   :  { %1148 = vrot.lane.b32.xlu1 %v2931_v49, %s2361_s22  ;;  %1146 = vrot.lane.b32.xlu0 %v2935_v50, %s2362_s10  ;;  %s3383_s10 = smov 16  }
 0xaaf   :  { %1136 = vrot.lane.b32.xlu2 %v2931_v49, %s2360_s21 }
 0xab7   :  { %1150 = vrot.lane.b32.xlu2 %v2935_v50, %s2361_s22 }
 0xb01   :  { %v2951_v45 = vpop.permute.xlu2 %1142 }
 0xb02   :  { %1220 = vrot.lane.b32.xlu0 %v2951_v45, %s2361_s22 }
 0xb09   :  { %v2955_v26 = vpop.permute.xlu2 %1136 }
 0xb0a   :  { %1183 = vrot.lane.b32.xlu1 %v2955_v26, %s2361_s22 }
 0xb10   :  { %v2959_v52 = vpop.permute.xlu1 %1140 }
 0xb11   :  { %v1151_v53 = vpop.permute.xlu2 %1150  ;;  %1218 = vrot.lane.b32.xlu2 %v2959_v52, %s2361_s22 }
 0xb12   :  { %2084 = vmatpush.xpose.msk.msra.mxu0 %vm266_vm0, %v1151_v53 }
 0xb18   :  { %v2964_v30 = vpop.permute.xlu1 %1144  ;;  %v2966_v47 = vpop.permute.xlu0 %1138 }
 0xb19   :  { %1185 = vrot.lane.b32.xlu0 %v2966_v47, %s2361_s22 }
 0xb20   :  { %v1149_v54 = vpop.permute.xlu1 %1148  ;;  %v2970_v48 = vpop.permute.xlu0 %1146 }
 0xb21   :  { %1255 = vrot.lane.b32.xlu2 %v2970_v48, %s2361_s22  ;;  %1253 = vrot.lane.b32.xlu0 %v2964_v30, %s2361_s22 }
 0xb22   :  { %2085 = vmatpush.xpose.msk.msra.mxu0 %vm266_vm0, %v1149_v54 }
 0xb25   :  { %2086 = vmatmul.msk.f32.vlgmr.msra.gmra.mxu0 %vm266_vm0, %v2931_v49 }
 0xb2d   :  { %2087 = vmatmul.msk.f32.gmra.mxu0 %vm266_vm0, %v2935_v50 }
 0xb6b   :  { %v1219_v56 = vpop.permute.xlu2 %1218 }
 0xb74   :  { %v1221_v57 = vpop.permute.xlu0 %1220 }
 0xb75   :  { %2092 = vmatpush.xpose.msk.msra.mxu3 %vm266_vm0, %v1221_v57 }
 0xb79   :  { %2093 = vmatpush.xpose.msk.msra.mxu3 %vm266_vm0, %v1219_v56 }
 0xb7b   :  { %v1256_v59 = vpop.permute.xlu2 %1255 }
 0xb7c   :  { %2094 = vmatmul.msk.f32.vlgmr.msra.gmra.mxu3 %vm266_vm0, %v2959_v52  ;;  %2096 = vmatpush.xpose.msk.msrb.mxu0 %vm266_vm0, %v1256_v59  ;;  %v1184_v61 = vpop.permute.xlu1 %1183 }
 0xb84   :  { %2095 = vmatmul.msk.f32.gmra.mxu3 %vm266_vm0, %v2951_v45 }
 0xb8b   :  { %v1186_v60 = vpop.permute.xlu0 %1185 }
 0xb8c   :  { %2088 = vmatpush.xpose.msk.msrb.mxu1 %vm266_vm0, %v1186_v60 }
 0xb90   :  { %2089 = vmatpush.xpose.msk.msrb.mxu1 %vm266_vm0, %v1184_v61 }
 0xb93   :  { %v1254_v55 = vpop.permute.xlu0 %1253  ;;  %2090 = vmatmul.msk.f32.vlgmr.msrb.gmra.mxu1 %vm266_vm0, %v2955_v26 }
 0xb94   :  { %2097 = vmatpush.xpose.msk.msrb.mxu0 %vm266_vm0, %v1254_v55 }
 0xb97   :  { %2098 = vmatmul.msk.f32.vlgmr.msrb.gmra.mxu0 %vm266_vm0, %v2964_v30 }
 0xb9b   :  { %2091 = vmatmul.msk.f32.gmra.mxu1 %vm266_vm0, %v2966_v47 }
 0xb9f   :  { %2099 = vmatmul.msk.f32.gmra.mxu0 %vm266_vm0, %v2970_v48 }
 0xba2   :  { %v1177_v46 = vpop.f32.mrf.mxu0 }
 0xba3   :  { %v1288_v58 = vmul.f32 0.35355338, %v1177_v46 }
 0xba5   :  { %v3010_v22 = vadd.f32 %v2329_v51, %v1288_v58 }
 0xba7   :  { %v1304_v25 = vsel %vm419_vm1, %v3010_v22, -inf }
 0xbaa   :  { %v1180_v5 = vpop.f32.mrf.mxu0 }
 0xbab   :  { %v1289_v24 = vmul.f32 0.35355338, %v1180_v5 }
 0xbad   :  { %v1297_v28 = vadd.f32 %v2330_v3, %v1289_v24 }
 0xbaf   :  { %v1307_v29 = vsel %vm419_vm1, %v1297_v28, -inf }
 0xbff   :  { %v1247_v62 = vpop.f32.mrf.mxu3 }
 0xc00   :  { %v1292_v63 = vmul.f32 0.35355338, %v1247_v62 }
 0xc02   :  { %v1300_v0 = vadd.f32 %v2329_v51, %v1292_v63 }
 0xc04   :  { %v1316_v1 = vsel %vm419_vm1, %v1300_v0, -inf }
 0xc05   :  { %1317 = vmax.xlane.f32.xlu2 %v1316_v1 }
 0xc07   :  { %v1250_v44 = vpop.f32.mrf.mxu3 }
 0xc08   :  { %v1293_v2 = vmul.f32 0.35355338, %v1250_v44 }
 0xc0a   :  { %v1301_v4 = vadd.f32 %v2330_v3, %v1293_v2 }
 0xc0c   :  { %v1319_v13 = vsel %vm419_vm1, %v1301_v4, -inf }
 0xc0d   :  { %1320 = vmax.xlane.f32.xlu2 %v1319_v13 }
 0xc10   :  { %v1212_v7 = vpop.f32.mrf.mxu1 }
 0xc11   :  { %v1290_v8 = vmul.f32 0.35355338, %v1212_v7  ;;  %v2179_v7 = vpack.i.bf16 %v2951_v45, %v2966_v47 }
 0xc13   :  { %v1298_v9 = vadd.f32 %v2329_v51, %v1290_v8 }
 0xc14   :  { %v1282_v10 = vpop.f32.mrf.mxu0 }
 0xc15   :  { %v1294_v11 = vmul.f32 0.35355338, %v1282_v10  ;;  %v1310_v12 = vsel %vm419_vm1, %v1298_v9, -inf }
 0xc16   :  { %1311 = vmax.xlane.f32.xlu1 %v1310_v12 }
 0xc17   :  { %v1302_v16 = vadd.f32 %v2329_v51, %v1294_v11 }
 0xc18   :  { %v1215_v14 = vpop.f32.mrf.mxu1 }
 0xc19   :  { %v1291_v15 = vmul.f32 0.35355338, %v1215_v14  ;;  %v1322_v21 = vsel %vm419_vm1, %v1302_v16, -inf }
 0xc1b   :  { %v1299_v17 = vadd.f32 %v2330_v3, %v1291_v15 }
 0xc1c   :  { %v1285_v18 = vpop.f32.mrf.mxu0 }
 0xc1d   :  { %v1295_v19 = vmul.f32 0.35355338, %v1285_v18  ;;  %v1313_v20 = vsel %vm419_vm1, %v1299_v17, -inf }
 0xc1e   :  { %1314 = vmax.xlane.f32.xlu0 %v1313_v20  ;;  %1323 = vmax.xlane.f32.xlu1 %v1322_v21 }
 0xc1f   :  { %v1303_v23 = vadd.f32 %v2330_v3, %v1295_v19 }
 0xc21   :  { %v1325_v27 = vsel %vm419_vm1, %v1303_v23, -inf }
 0xc26   :  { %1305 = vmax.xlane.f32.xlu1 %v1304_v25  ;;  %1326 = vmax.xlane.f32.xlu0 %v1325_v27 }
 0xc2e   :  { %1308 = vmax.xlane.f32.xlu0 %v1307_v29 }
 0xc78   :  { %v1318_v32 = vpop.xlane.xlu2 %1317 }
 0xc79   :  { %v1332_v33 = vsub.f32 %v1300_v0, %v1318_v32 }
 0xc7b   :  { %v1344_v34 = vmul.f32 1.442695, %v1332_v33 }
 0xc7d   :  { %2277 = vpow2.f32 %v1344_v34 }
 0xc80   :  { %v1321_v36 = vpop.xlane.xlu2 %1320 }
 0xc81   :  { %v1333_v39 = vsub.f32 %v1301_v4, %v1321_v36  ;;  %v2184_v4 = vpack.i.bf16 %v2959_v52, %v2955_v26  ;;  %v2194_v52 = vpack.i.bf16 %v2931_v49, %v2935_v50 }
 0xc83   :  { %v3016_v6 = vpop.eup %2277  ;;  %v1346_v40 = vmul.f32 1.442695, %v1333_v39 }
 0xc84   :  { %v1364_v42 = vsel %vm419_vm1, %v3016_v6, 0.0 }
 0xc85   :  { %2279 = vpow2.f32 %v1346_v40  ;;  %1365 = vadd.xlane.f32.xlu1 %v1364_v42 }
 0xc89   :  { %v1312_v41 = vpop.xlane.xlu1 %1311 }
 0xc8a   :  { %v1330_v43 = vsub.f32 %v1298_v9, %v1312_v41  ;;  %v2189_v9 = vpack.i.bf16 %v2964_v30, %v2970_v48 }
 0xc8b   :  { %v3020_v37 = vpop.eup %2279 }
 0xc8c   :  { %v1340_v53 = vmul.f32 1.442695, %v1330_v43  ;;  %v1367_v54 = vsel %vm419_vm1, %v3020_v37, 0.0 }
 0xc8d   :  { %1368 = vadd.xlane.f32.xlu1 %v1367_v54 }
 0xc8e   :  { %2281 = vpow2.f32 %v1340_v53 }
 0xc91   :  { %v1315_v56 = vpop.xlane.xlu0 %1314  ;;  %v1324_v57 = vpop.xlane.xlu1 %1323 }
 0xc92   :  { %v1331_v59 = vsub.f32 %v1299_v17, %v1315_v56  ;;  %v1334_v60 = vsub.f32 %v1302_v16, %v1324_v57 }
 0xc94   :  { %v3024_v61 = vpop.eup %2281  ;;  %v1342_v55 = vmul.f32 1.442695, %v1331_v59  ;;  %v1348_v62 = vmul.f32 1.442695, %v1334_v60 }
 0xc95   :  { %v1358_v63 = vsel %vm419_vm1, %v3024_v61, 0.0 }
 0xc96   :  { %2283 = vpow2.f32 %v1342_v55  ;;  %1359 = vadd.xlane.f32.xlu2 %v1358_v63 }
 0xc97   :  { %2285 = vpow2.f32 %v1348_v62 }
 0xc99   :  { %v1327_v46 = vpop.xlane.xlu0 %1326  ;;  %v1306_v11 = vpop.xlane.xlu1 %1305 }
 0xc9a   :  { %v1335_v51 = vsub.f32 %v1303_v23, %v1327_v46  ;;  %v1328_v12 = vsub.f32 %v3010_v22, %v1306_v11 }
 0xc9c   :  { %v3028_v0 = vpop.eup %2283  ;;  %v1350_v1 = vmul.f32 1.442695, %v1335_v51  ;;  %v1336_v47 = vmul.f32 1.442695, %v1328_v12 }
 0xc9d   :  { %v3030_v44 = vpop.eup %2285  ;;  %v1361_v2 = vsel %vm419_vm1, %v3028_v0, 0.0 }
 0xc9e   :  { %1362 = vadd.xlane.f32.xlu2 %v1361_v2  ;;  %v1370_v3 = vsel %vm419_vm1, %v3030_v44, 0.0  ;;  %2287 = vpow2.f32 %v1350_v1 }
 0xc9f   :  { %1371 = vadd.xlane.f32.xlu0 %v1370_v3 }
 0xca1   :  { %v1309_v8 = vpop.xlane.xlu0 %1308 }
 0xca2   :  { %v1329_v10 = vsub.f32 %v1297_v28, %v1309_v8 }
 0xca4   :  { %v3038_v5 = vpop.eup %2287  ;;  %v1338_v26 = vmul.f32 1.442695, %v1329_v10 }
 0xca5   :  { %v1373_v13 = vsel %vm419_vm1, %v3038_v5, 0.0 }
 0xca6   :  { %2185 = vrot.lane.b32.xlu1 %v2184_v4, %s2364_s27  ;;  %1374 = vadd.xlane.f32.xlu2 %v1373_v13  ;;  %2289 = vpow2.f32 %v1338_v26 }
 0xca7   :  { %2291 = vpow2.f32 %v1336_v47 }
 0xcac   :  { %v3053_v45 = vpop.eup %2289 }
 0xcad   :  { %v1355_v14 = vsel %vm419_vm1, %v3053_v45, 0.0  ;;  %v3057_v30 = vpop.eup %2291 }
 0xcae   :  { %v1352_v48 = vsel %vm419_vm1, %v3057_v30, 0.0 }
 0xcb3   :  { %2180 = vrot.lane.b32.xlu0 %v2179_v7, %s2364_s27 }
 0xcbe   :  { %2190 = vrot.lane.b32.xlu2 %v2189_v9, %s2364_s27 }
 0xcc6   :  { %2195 = vrot.lane.b32.xlu2 %v2194_v52, %s2364_s27  ;;  %s2030_s27 = sshll.u32 %s3355_s18, 4  ;;  %s2031_s27 = int_to_ptr.hbm [resolvable:$true] %s2030_s27 }
 0xcd0   :  { %1356 = vadd.xlane.f32.xlu1 %v1355_v14 }
 0xcdd   :  { %1353 = vadd.xlane.f32.xlu0 %v1352_v48 }
 0xcf8   :  { %v1366_v49 = vpop.xlane.xlu1 %1365 }
 0xcf9   :  { %2293 = vrcp.f32 %v1366_v49  ;;  %v1445_v32 = vand.u32 2147483647, %v1366_v49  ;;  %v1447_v33 = vand.u32 2147483648, %v1366_v49  ;;  %vm1441_vm11 = vweird.f32 %v1366_v49 }
 0xcfb   :  { %vm3092_vm13 = vcmp.eq.f32.partialorder %v1445_v32, 8.507059e+37  ;;  %v1448_v56 = vor.u32 1.1754944e-38, %v1447_v33 }
 0xcff   :  { %v2294_v15 = vpop.eup %2293 }
 0xd00   :  { %v3064_v16 = vpop.xlane.xlu1 %1368  ;;  %v1437_v17 = vmul.f32 %v2294_v15, %v1366_v49  ;;  %vm1442_vm10 = vweird.f32 %v2294_v15 }
 0xd01   :  { %vm3086_vm12 = vmor %vm1441_vm11, %vm1442_vm10  ;;  %vm1456_vm3 = vweird.f32 %v3064_v16  ;;  %v1462_v13 = vand.u32 2147483648, %v3064_v16  ;;  %v1460_v7 = vand.u32 2147483647, %v3064_v16 }
 0xd02   :  { %v1438_v58 = vsub.f32 1.0, %v1437_v17 }
 0xd04   :  { %v1439_v23 = vmul.f32 %v2294_v15, %v1438_v58 }
 0xd06   :  { %v1440_v29 = vadd.f32 %v2294_v15, %v1439_v23 }
 0xd08   :  { %v1444_v53 = vsel %vm3086_vm12, %v2294_v15, %v1440_v29 }
 0xd09   :  { %v3061_v50 = vpop.xlane.xlu2 %1359  ;;  %v1449_v4 = vsel %vm3092_vm13, %v1448_v56, %v1444_v53  ;;  %v1463_v53 = vor.u32 1.1754944e-38, %v1462_v13 }
 0xd0a   :  { %2295 = vrcp.f32 %v3061_v50  ;;  %vm1411_vm4 = vweird.f32 %v3061_v50  ;;  %v1417_v55 = vand.u32 2147483648, %v3061_v50  ;;  %v1415_v1 = vand.u32 2147483647, %v3061_v50 }
 0xd0b   :  { %2297 = vrcp.f32 %v3064_v16 }
 0xd0c   :  { %v1418_v11 = vor.u32 1.1754944e-38, %v1417_v55  ;;  %vm1416_vm11 = vcmp.eq.f32.partialorder %v1415_v1, 8.507059e+37 }
 0xd10   :  { %v3067_v18 = vpop.eup %2295 }
 0xd11   :  { %v3069_v19 = vpop.xlane.xlu2 %1362  ;;  %v1407_v20 = vmul.f32 %v3067_v18, %v3061_v50  ;;  %v3074_v22 = vpop.eup %2297  ;;  %vm1412_vm14 = vweird.f32 %v3067_v18 }
 0xd12   :  { %v1372_v21 = vpop.xlane.xlu0 %1371  ;;  %2299 = vrcp.f32 %v3069_v19  ;;  %v1452_v27 = vmul.f32 %v3074_v22, %v3064_v16  ;;  %vm3102_vm5 = vmor %vm1411_vm4, %vm1412_vm14  ;;  %vm1457_vm8 = vweird.f32 %v3074_v22  ;;  %v1432_v15 = vand.u32 2147483648, %v3069_v19 }
 0xd13   :  { %2301 = vrcp.f32 %v1372_v21  ;;  %v1408_v24 = vsub.f32 1.0, %v1407_v20  ;;  %v1477_v60 = vand.u32 2147483648, %v1372_v21  ;;  %v1475_v62 = vand.u32 2147483647, %v1372_v21 }
 0xd14   :  { %v1453_v41 = vsub.f32 1.0, %v1452_v27  ;;  %vm1471_vm6 = vweird.f32 %v1372_v21  ;;  %vm1426_vm4 = vweird.f32 %v3069_v19  ;;  %v1430_v16 = vand.u32 2147483647, %v3069_v19 }
 0xd15   :  { %v1409_v34 = vmul.f32 %v3067_v18, %v1408_v24  ;;  %v1478_v10 = vor.u32 1.1754944e-38, %v1477_v60  ;;  %vm1476_vm10 = vcmp.eq.f32.partialorder %v1475_v62, 8.507059e+37  ;;  %v1433_v54 = vor.u32 1.1754944e-38, %v1432_v15 }
 0xd16   :  { %v1454_v46 = vmul.f32 %v3074_v22, %v1453_v41 }
 0xd17   :  { %v1410_v57 = vadd.f32 %v3067_v18, %v1409_v34 }
 0xd18   :  { %v3076_v25 = vpop.eup %2299  ;;  %v1455_v49 = vadd.f32 %v3074_v22, %v1454_v46  ;;  %v2186_v17 = vpop.permute.xlu1 %2185 }
 0xd19   :  { %v2302_v28 = vpop.eup %2301  ;;  %v3081_v39 = vpop.xlane.xlu2 %1374  ;;  %v1422_v40 = vmul.f32 %v3076_v25, %v3069_v19  ;;  %v1414_v8 = vsel %vm3102_vm5, %v3067_v18, %v1410_v57  ;;  %vm1427_vm13 = vweird.f32 %v3076_v25  ;;  %v2188_v32 = vunpack.i.h.bf16 %v2186_v17 }
 0xd1a   :  { %v1467_v36 = vmul.f32 %v2302_v28, %v1372_v21  ;;  %2303 = vrcp.f32 %v3081_v39  ;;  %vm1472_vm15 = vweird.f32 %v2302_v28  ;;  %v1419_v50 = vsel %vm1416_vm11, %v1418_v11, %v1414_v8 }
 0xd1b   :  { %v1423_v63 = vsub.f32 1.0, %v1422_v40  ;;  %vm1473_vm7 = vmor %vm1471_vm6, %vm1472_vm15  ;;  %v1492_v18 = vand.u32 2147483648, %v3081_v39  ;;  %v2187_v33 = vunpack.i.l.bf16 %v2186_v17  ;;  %vm1486_vm14 = vweird.f32 %v3081_v39 }
 0xd1c   :  { %v1468_v43 = vsub.f32 1.0, %v1467_v36  ;;  %vm3136_vm15 = vmor %vm1456_vm3, %vm1457_vm8  ;;  %v1420_v36 = vmul.f32 %v3024_v61, %v1419_v50  ;;  %vm1461_vm8 = vcmp.eq.f32.partialorder %v1460_v7, 8.507059e+37 }
 0xd1d   :  { %v1424_v12 = vmul.f32 %v3076_v25, %v1423_v63  ;;  %v1493_v42 = vor.u32 1.1754944e-38, %v1492_v18  ;;  %vm1428_vm3 = vmor %vm1426_vm4, %vm1427_vm13  ;;  %v1459_v19 = vsel %vm3136_vm15, %v3074_v22, %v1455_v49 }
 0xd1e   :  { %v1469_v59 = vmul.f32 %v2302_v28, %v1468_v43  ;;  %v1464_v60 = vsel %vm1461_vm8, %v1463_v53, %v1459_v19 }
 0xd1f   :  { %v1425_v29 = vadd.f32 %v3076_v25, %v1424_v12  ;;  %v1465_v62 = vmul.f32 %v3020_v37, %v1464_v60 }
 0xd20   :  { %v1470_v2 = vadd.f32 %v2302_v28, %v1469_v59  ;;  %v3107_v3 = vpop.eup %2303 }
 0xd21   :  { %v1482_v26 = vmul.f32 %v3107_v3, %v3081_v39  ;;  %v2191_v52 = vpop.permute.xlu2 %2190  ;;  %vm1487_vm12 = vweird.f32 %v3107_v3  ;;  %v1429_v61 = vsel %vm1428_vm3, %v3076_v25, %v1425_v29 }
 0xd22   :  { %v1474_v9 = vsel %vm1473_vm7, %v2302_v28, %v1470_v2  ;;  %v2192_v47 = vunpack.i.l.bf16 %v2191_v52  ;;  %v2193_v58 = vunpack.i.h.bf16 %v2191_v52  ;;  %v1490_v28 = vand.u32 2147483647, %v3081_v39  ;;  %vm3146_vm5 = vmor %vm1486_vm14, %vm1487_vm12 }
 0xd23   :  { %v1479_v14 = vsel %vm1476_vm10, %v1478_v10, %v1474_v9  ;;  %v1483_v48 = vsub.f32 1.0, %v1482_v26  ;;  %v1450_v39 = vmul.f32 %v3016_v6, %v1449_v4  ;;  %vm1431_vm7 = vcmp.eq.f32.partialorder %v1430_v16, 8.507059e+37 }
 0xd24   :  { %1627 = vmatpush.msra.mxu0 %v2192_v47  ;;  %v1480_v27 = vmul.f32 %v3030_v44, %v1479_v14  ;;  %vm1491_vm6 = vcmp.eq.f32.partialorder %v1490_v28, 8.507059e+37  ;;  %v1434_v59 = vsel %vm1431_vm7, %v1433_v54, %v1429_v61 }
 0xd25   :  { %v2181_v20 = vpop.permute.xlu0 %2180  ;;  %v1484_v21 = vmul.f32 %v3107_v3, %v1483_v48  ;;  %v1435_v25 = vmul.f32 %v3028_v0, %v1434_v59 }
 0xd26   :  { %v2183_v23 = vunpack.i.h.bf16 %v2181_v20  ;;  %v2182_v24 = vunpack.i.l.bf16 %v2181_v20  ;;  %1628 = vmatpush.msra.mxu0 %v2193_v58  ;;  %v2110_v20 = vld [vmem:[%s3342_s5 + $0x30] sm:$0xff] }
 0xd27   :  { %v1485_v34 = vadd.f32 %v3107_v3, %v1484_v21  ;;  %2106 = vmatmul.msk.f32.vlgmr.msra.gmra.mxu0 %vm419_vm1, %v1480_v27  ;;  %v2109_v21 = vld [vmem:[%s3342_s5 + $0x28] sm:$0xff] }
 0xd28   :  { %1557 = vmatpush.msra.mxu2 %v2182_v24  ;;  %1592 = vmatpush.msrb.mxu3 %v2183_v23  ;;  %v2108_v23 = vld [vmem:[%s3342_s5 + $0x20] sm:$0xff] }
 0xd29   :  { %v2196_v41 = vpop.permute.xlu2 %2195  ;;  %v1489_v43 = vsel %vm3146_vm5, %v3107_v3, %v1485_v34 }
 0xd2a   :  { %1558 = vmatpush.msra.mxu2 %v2187_v33  ;;  %1593 = vmatpush.msrb.mxu3 %v2188_v32  ;;  %v2197_v6 = vunpack.i.l.bf16 %v2196_v41  ;;  %v1494_v56 = vsel %vm1491_vm6, %v1493_v42, %v1489_v43  ;;  %v2198_v57 = vunpack.i.h.bf16 %v2196_v41  ;;  %v2208_v43 = vld [vmem:[%s3343_s6 + $0x1] ss:$0 sm:$0xff] }
 0xd2b   :  { %2102 = vmatmul.msk.f32.vlgmr.msra.gmra.mxu2 %vm419_vm1, %v1420_v36  ;;  %2104 = vmatmul.msk.f32.vlgmr.msrb.gmra.mxu3 %vm419_vm1, %v1450_v39  ;;  %v1495_v55 = vmul.f32 %v3038_v5, %v1494_v56 }
 0xd2c   :  { %1522 = vmatpush.msra.mxu1 %v2197_v6 }
 0xd2e   :  { %1523 = vmatpush.msra.mxu1 %v2198_v57 }
 0xd2f   :  { %2107 = vmatmul.msk.f32.gmra.mxu0 %vm419_vm1, %v1495_v55 }
 0xd33   :  { %2103 = vmatmul.msk.f32.gmra.mxu2 %vm419_vm1, %v1435_v25  ;;  %2105 = vmatmul.msk.f32.gmra.mxu3 %vm419_vm1, %v1465_v62 }
 0xd43   :  { %v1357_v22 = vpop.xlane.xlu1 %1356 }
 0xd44   :  { %2305 = vrcp.f32 %v1357_v22  ;;  %v1402_v26 = vand.u32 2147483648, %v1357_v22  ;;  %vm1396_vm15 = vweird.f32 %v1357_v22  ;;  %v1400_v12 = vand.u32 2147483647, %v1357_v22 }
 0xd46   :  { %v1403_v14 = vor.u32 1.1754944e-38, %v1402_v26  ;;  %vm1401_vm5 = vcmp.eq.f32.partialorder %v1400_v12, 8.507059e+37 }
 0xd4a   :  { %v2306_v46 = vpop.eup %2305 }
 0xd4b   :  { %v1392_v51 = vmul.f32 %v2306_v46, %v1357_v22  ;;  %vm1397_vm14 = vweird.f32 %v2306_v46 }
 0xd4c   :  { %vm1398_vm4 = vmor %vm1396_vm15, %vm1397_vm14 }
 0xd4d   :  { %v1393_v2 = vsub.f32 1.0, %v1392_v51 }
 0xd4f   :  { %v1394_v13 = vmul.f32 %v2306_v46, %v1393_v2 }
 0xd50   :  { %v1354_v63 = vpop.xlane.xlu0 %1353 }
 0xd51   :  { %2307 = vrcp.f32 %v1354_v63  ;;  %v1387_v4 = vand.u32 2147483648, %v1354_v63  ;;  %v1385_v0 = vand.u32 2147483647, %v1354_v63  ;;  %vm1381_vm11 = vweird.f32 %v1354_v63 }
 0xd52   :  { %v1395_v10 = vadd.f32 %v2306_v46, %v1394_v13  ;;  %v2119_v13 = vld [vmem:[%s3344_s7 + $0x30] sm:$0xff] }
 0xd53   :  { %v1388_v8 = vor.u32 1.1754944e-38, %v1387_v4  ;;  %vm1386_vm13 = vcmp.eq.f32.partialorder %v1385_v0, 8.507059e+37  ;;  %v2120_v4 = vld [vmem:[%s3344_s7 + $0x38] sm:$0xff]  ;;  %v2118_v0 = vld [vmem:[%s3344_s7 + $0x28] sm:$0xff] }
 0xd54   :  { %v1399_v47 = vsel %vm1398_vm4, %v2306_v46, %v1395_v10  ;;  %1825 = vmatpush.msrb.mxu2 %v2120_v4  ;;  %v2133_v4 = vld [vmem:[%s3346_s9 + $0xc8] sm:$0xff] }
 0xd55   :  { %v1404_v48 = vsel %vm1401_vm5, %v1403_v14, %v1399_v47 }
 0xd56   :  { %v1405_v49 = vmul.f32 %v3053_v45, %v1404_v48  ;;  %v2111_v45 = vld [vmem:[%s3342_s5 + $0x38] sm:$0xff]  ;;  %1826 = vmatpush.msrb.mxu2 %v2119_v13 }
 0xd57   :  { %v2308_v1 = vpop.eup %2307  ;;  %1694 = vmatpush.msrb.mxu1 %v2111_v45  ;;  %v2131_v13 = vld [vmem:[%s3346_s9 + $0xb8] sm:$0xff] }
 0xd58   :  { %v1377_v3 = vmul.f32 %v2308_v1, %v1354_v63  ;;  %vm1382_vm10 = vweird.f32 %v2308_v1  ;;  %1827 = vmatpush.msrb.mxu2 %v2118_v0  ;;  %v2129_v0 = vld [vmem:[%s3346_s9 + $0xa8] sm:$0xff] }
 0xd59   :  { %vm1383_vm12 = vmor %vm1381_vm11, %vm1382_vm10  ;;  %1695 = vmatpush.msrb.mxu1 %v2110_v20 }
 0xd5a   :  { %v1378_v5 = vsub.f32 1.0, %v1377_v3 }
 0xd5b   :  { %1696 = vmatpush.msrb.mxu1 %v2109_v21 }
 0xd5c   :  { %v1379_v7 = vmul.f32 %v2308_v1, %v1378_v5 }
 0xd5d   :  { %1697 = vmatpush.msrb.mxu1 %v2108_v23 }
 0xd5e   :  { %v1380_v37 = vadd.f32 %v2308_v1, %v1379_v7 }
 0xd60   :  { %v1384_v9 = vsel %vm1383_vm12, %v2308_v1, %v1380_v37 }
 0xd61   :  { %v1389_v52 = vsel %vm1386_vm13, %v1388_v8, %v1384_v9  ;;  %v2117_v8 = vld [vmem:[%s3344_s7 + $0x20] sm:$0xff] }
 0xd62   :  { %v1390_v11 = vmul.f32 %v3057_v30, %v1389_v52  ;;  %1828 = vmatpush.msrb.mxu2 %v2117_v8  ;;  %v2127_v8 = vld [vmem:[%s3346_s9 + $0x98] sm:$0xff] }
 0xd64   :  { %2100 = vmatmul.msk.f32.vlgmr.msra.gmra.mxu1 %vm419_vm1, %v1390_v11 }
 0xd6c   :  { %2101 = vmatmul.msk.f32.gmra.mxu1 %vm419_vm1, %v1405_v49 }
 0xda4   :  { %v1630_v50 = vpop.f32.mrf.mxu0 }
 0xda5   :  { %1654 = vrot.lane.b32.xlu2 %v1630_v50, %s2367_s0 }
 0xdac   :  { %v1633_v58 = vpop.f32.mrf.mxu0 }
 0xdae   :  { %v1560_v15 = vpop.f32.mrf.mxu2  ;;  %v1595_v17 = vpop.f32.mrf.mxu3 }
 0xdaf   :  { %1638 = vrot.lane.b32.xlu2 %v1560_v15, %s3382_s3 }
 0xdb6   :  { %v1598_v30 = vpop.f32.mrf.mxu3  ;;  %v1563_v18 = vpop.f32.mrf.mxu2 }
 0xdb7   :  { %1646 = vrot.lane.b32.xlu2 %v1595_v17, %s3383_s10  ;;  %1648 = vrot.lane.b32.xlu0 %v1598_v30, %s3383_s10 }
 0xdbf   :  { %1640 = vrot.lane.b32.xlu2 %v1563_v18, %s3382_s3 }
 0xdc7   :  { %1656 = vrot.lane.b32.xlu2 %v1633_v58, %s2367_s0 }
 0xde1   :  { %v1525_v28 = vpop.f32.mrf.mxu1 }
 0xde9   :  { %v1528_v36 = vpop.f32.mrf.mxu1 }
 0xdff   :  { %v1655_v24 = vpop.permute.xlu2 %1654 }
 0xe09   :  { %v1639_v27 = vpop.permute.xlu2 %1638 }
 0xe0a   :  { %v1660_v29 = vsel %vm266_vm0, %v1525_v28, %v1639_v27 }
 0xe11   :  { %v1647_v32 = vpop.permute.xlu2 %1646 }
 0xe12   :  { %v1662_v33 = vsel %vm419_vm1, %v1660_v29, %v1647_v32  ;;  %v2209_v29 = vld [vmem:[%s3350_s13 + $0x1] ss:$0 sm:$0xff] }
 0xe13   :  { %v1664_v34 = vsel %vm780_vm9, %v1662_v33, %v1655_v24  ;;  %v2139_v33 = vld [vmem:[%s3346_s9 + $0xf8] sm:$0xff] }
 0xe14   :  { %2113 = vmatmul.msk.f32.vlgmr.msrb.gmra.mxu1 %vm121_vm2, %v1664_v34  ;;  %v2138_v34 = vld [vmem:[%s3346_s9 + $0xf0] sm:$0xff]  ;;  %1876 = vmatpush.msra.mxu3 %v2139_v33 }
 0xe16   :  { %1877 = vmatpush.msra.mxu3 %v2138_v34  ;;  %v2212_v34 = vld [vmem:[%s3371_s28 + $0x1] ss:$0 sm:$0xff] }
 0xe19   :  { %v1641_v44 = vpop.permute.xlu2 %1640 }
 0xe1a   :  { %v1661_v39 = vsel %vm266_vm0, %v1528_v36, %v1641_v44 }
 0xe21   :  { %v1657_v16 = vpop.permute.xlu2 %1656 }
 0xe29   :  { %v1649_v40 = vpop.permute.xlu0 %1648 }
 0xe2a   :  { %v1663_v42 = vsel %vm419_vm1, %v1661_v39, %v1649_v40  ;;  %v2210_v39 = vld [vmem:[%s3351_s14 + $0x1] ss:$0 sm:$0xff]  ;;  %v2137_v40 = vld [vmem:[%s3346_s9 + $0xe8] sm:$0xff] }
 0xe2b   :  { %v1665_v41 = vsel %vm780_vm9, %v1663_v42, %v1657_v16  ;;  %1878 = vmatpush.msra.mxu3 %v2137_v40 }
 0xe2c   :  { %2114 = vmatmul.msk.f32.gmra.mxu1 %vm121_vm2, %v1665_v41  ;;  %v2136_v41 = vld [vmem:[%s3346_s9 + $0xe0] sm:$0xff] }
 0xe2d   :  { %1879 = vmatpush.msra.mxu3 %v2136_v41 }
 0xe91   :  { %v1699_v6 = vpop.f32.mrf.mxu1 }
 0xe92   :  { %v1700_v61 = vadd.f32 %v2208_v43, %v1699_v6 }
 0xe94   :  { %v3202_v19 = vadd.f32 %v1700_v61, %v2884_v31 }
 0xe96   :  { %v1711_v53 = vsel %vm121_vm2, %v3202_v19, 0.0 }
 0xe97   :  { %1712 = vadd.xlane.f32.xlu1 %v1711_v53 }
 0xea9   :  { %v1702_v54 = vpop.f32.mrf.mxu1 }
 0xeaa   :  { %v1703_v56 = vadd.f32 %v2208_v43, %v1702_v54 }
 0xeac   :  { %v3207_v57 = vadd.f32 %v1703_v56, %v2889_v35 }
 0xeae   :  { %v1714_v59 = vsel %vm121_vm2, %v3207_v57, 0.0 }
 0xeaf   :  { %1715 = vadd.xlane.f32.xlu2 %v1714_v59 }
 0xf0a   :  { %v1713_v60 = vpop.xlane.xlu1 %1712 }
 0xf0b   :  { %v1717_v55 = vmul.f32 %v1713_v60, %v2533_v38 }
 0xf0d   :  { %v1719_v25 = vsub.f32 %v3202_v19, %v1717_v55 }
 0xf0f   :  { %v1721_v31 = vmul.f32 %v1719_v25, %v1719_v25 }
 0xf11   :  { %v1723_v62 = vsel %vm121_vm2, %v1721_v31, 0.0 }
 0xf12   :  { %1724 = vadd.xlane.f32.xlu1 %v1723_v62 }
 0xf22   :  { %v1716_v22 = vpop.xlane.xlu2 %1715 }
 0xf23   :  { %v1718_v63 = vmul.f32 %v1716_v22, %v2533_v38 }
 0xf25   :  { %v3216_v46 = vsub.f32 %v3207_v57, %v1718_v63 }
 0xf27   :  { %v1722_v35 = vmul.f32 %v3216_v46, %v3216_v46 }
 0xf29   :  { %v1726_v51 = vsel %vm121_vm2, %v1722_v35, 0.0 }
 0xf2a   :  { %1727 = vadd.xlane.f32.xlu0 %v1726_v51 }
 0xf85   :  { %v1725_v1 = vpop.xlane.xlu1 %1724 }
 0xf86   :  { %v1729_v2 = vmul.f32 %v1725_v1, %v2533_v38 }
 0xf88   :  { %v1731_v3 = vadd.f32 1e-05, %v1729_v2 }
 0xf8a   :  { %2309 = vrsqrt.f32 %v1731_v3  ;;  %vm1740_vm0 = vcmp.eq.f32.partialorder %v1731_v3, inf  ;;  %v1743_v11 = vand.u32 2147483648, %v1731_v3  ;;  %vm1742_vm1 = vcmp.eq.f32.partialorder %v1731_v3, 0.0 }
 0xf90   :  { %v2310_v5 = vpop.eup %2309 }
 0xf91   :  { %v1734_v7 = vmul.f32 %v2310_v5, %v1731_v3 }
 0xf93   :  { %v1735_v37 = vmul.f32 %v2310_v5, %v1734_v7  ;;  %v2130_v7 = vld [vmem:[%s3346_s9 + $0xb0] sm:$0xff] }
 0xf95   :  { %v1736_v9 = vmul.f32 0.5, %v1735_v37  ;;  %v2128_v37 = vld [vmem:[%s3346_s9 + $0xa0] sm:$0xff] }
 0xf97   :  { %v1737_v10 = vsub.f32 1.5, %v1736_v9  ;;  %v2126_v9 = vld [vmem:[%s3346_s9 + $0x90] sm:$0xff] }
 0xf99   :  { %v1738_v26 = vmul.f32 %v2310_v5, %v1737_v10  ;;  %v2134_v5 = vld [vmem:[%s3346_s9 + $0xd0] sm:$0xff]  ;;  %v2125_v10 = vld [vmem:[%s3346_s9 + $0x88] sm:$0xff] }
 0xf9b   :  { %v1739_v52 = vmul.f32 %v1738_v26, %v1731_v3  ;;  %v2124_v26 = vld [vmem:[%s3346_s9 + $0x80] sm:$0xff] }
 0xf9d   :  { %v1741_v12 = vsel %vm1740_vm0, %v1731_v3, %v1739_v52  ;;  %v1728_v47 = vpop.xlane.xlu0 %1727  ;;  %v2135_v3 = vld [vmem:[%s3346_s9 + $0xd8] sm:$0xff]  ;;  %v2211_v52 = vld [vmem:[%s3345_s8 + $0x1] ss:$0 sm:$0xff] }
 0xf9e   :  { %v1744_v14 = vsel %vm1742_vm1, %v1743_v11, %v1741_v12  ;;  %v1730_v48 = vmul.f32 %v1728_v47, %v2533_v38  ;;  %1880 = vmatpush.msra.mxu3 %v2135_v3  ;;  %v1989_v3 = vld [vmem:[%s3354_s17] sm:$0xff] }
 0xf9f   :  { %2311 = vrcp.f32 %v1744_v14  ;;  %v1768_v18 = vand.u32 2147483648, %v1744_v14  ;;  %v1766_v20 = vand.u32 2147483647, %v1744_v14  ;;  %vm1762_vm3 = vweird.f32 %v1744_v14 }
 0xfa0   :  { %v1732_v49 = vadd.f32 1e-05, %v1730_v48  ;;  %1881 = vmatpush.msra.mxu3 %v2134_v5 }
 0xfa1   :  { %v1769_v24 = vor.u32 1.1754944e-38, %v1768_v18  ;;  %vm1767_vm7 = vcmp.eq.f32.partialorder %v1766_v20, 8.507059e+37 }
 0xfa2   :  { %2313 = vrsqrt.f32 %v1732_v49  ;;  %vm1752_vm8 = vcmp.eq.f32.partialorder %v1732_v49, inf  ;;  %v1755_v61 = vand.u32 2147483648, %v1732_v49  ;;  %vm1754_vm10 = vcmp.eq.f32.partialorder %v1732_v49, 0.0  ;;  %1882 = vmatpush.msra.mxu3 %v2133_v4 }
 0xfa5   :  { %v2312_v50 = vpop.eup %2311 }
 0xfa6   :  { %v1758_v15 = vmul.f32 %v2312_v50, %v1744_v14  ;;  %vm1763_vm9 = vweird.f32 %v2312_v50 }
 0xfa7   :  { %vm1764_vm6 = vmor %vm1762_vm3, %vm1763_vm9 }
 0xfa8   :  { %v1759_v17 = vsub.f32 1.0, %v1758_v15  ;;  %v2314_v30 = vpop.eup %2313 }
 0xfa9   :  { %v1746_v58 = vmul.f32 %v2314_v30, %v1732_v49 }
 0xfaa   :  { %v1760_v45 = vmul.f32 %v2312_v50, %v1759_v17 }
 0xfab   :  { %v1747_v21 = vmul.f32 %v2314_v30, %v1746_v58 }
 0xfac   :  { %v1761_v23 = vadd.f32 %v2312_v50, %v1760_v45 }
 0xfad   :  { %v1748_v27 = vmul.f32 0.5, %v1747_v21 }
 0xfae   :  { %v1765_v28 = vsel %vm1764_vm6, %v2312_v50, %v1761_v23 }
 0xfaf   :  { %v1770_v32 = vsel %vm1767_vm7, %v1769_v24, %v1765_v28  ;;  %v1749_v44 = vsub.f32 1.5, %v1748_v27 }
 0xfb0   :  { %v1771_v36 = vmul.f32 %v1770_v32, %v1719_v25 }
 0xfb1   :  { %v1750_v42 = vmul.f32 %v2314_v30, %v1749_v44 }
 0xfb2   :  { %v1790_v16 = vmul.f32 %v2209_v29, %v1771_v36 }
 0xfb3   :  { %v1751_v6 = vmul.f32 %v1750_v42, %v1732_v49 }
 0xfb4   :  { %v1795_v43 = vadd.f32 %v2210_v39, %v1790_v16 }
 0xfb5   :  { %v1753_v53 = vsel %vm1752_vm8, %v1732_v49, %v1751_v6 }
 0xfb6   :  { %2122 = vmatmul.msk.f32.vlgmr.msrb.gmra.mxu2 %vm121_vm2, %v1795_v43  ;;  %v1756_v54 = vsel %vm1754_vm10, %v1755_v61, %v1753_v53 }
 0xfb7   :  { %2315 = vrcp.f32 %v1756_v54  ;;  %v1783_v55 = vand.u32 2147483648, %v1756_v54  ;;  %v1781_v31 = vand.u32 2147483647, %v1756_v54  ;;  %vm1777_vm12 = vweird.f32 %v1756_v54 }
 0xfb9   :  { %v1784_v22 = vor.u32 1.1754944e-38, %v1783_v55  ;;  %vm1782_vm14 = vcmp.eq.f32.partialorder %v1781_v31, 8.507059e+37 }
 0xfbd   :  { %v2316_v56 = vpop.eup %2315 }
 0xfbe   :  { %v1773_v59 = vmul.f32 %v2316_v56, %v1756_v54  ;;  %vm1778_vm11 = vweird.f32 %v2316_v56 }
 0xfbf   :  { %vm1779_vm13 = vmor %vm1777_vm12, %vm1778_vm11 }
 0xfc0   :  { %v1774_v60 = vsub.f32 1.0, %v1773_v59 }
 0xfc2   :  { %v1775_v25 = vmul.f32 %v2316_v56, %v1774_v60 }
 0xfc4   :  { %v1776_v62 = vadd.f32 %v2316_v56, %v1775_v25 }
 0xfc6   :  { %v1780_v63 = vsel %vm1779_vm13, %v2316_v56, %v1776_v62 }
 0xfc7   :  { %v1785_v35 = vsel %vm1782_vm14, %v1784_v22, %v1780_v63  ;;  %v1992_v63 = vld [vmem:[%s3354_s17 + $0x18] sm:$0xff] }
 0xfc8   :  { %v1786_v51 = vmul.f32 %v1785_v35, %v3216_v46  ;;  %v2132_v46 = vld [vmem:[%s3346_s9 + $0xc0] sm:$0xff]  ;;  %v1991_v35 = vld [vmem:[%s3354_s17 + $0x10] sm:$0xff]  ;;  %2011 = vmatpush.msrb.mxu0 %v1992_v63 }
 0xfc9   :  { %1883 = vmatpush.msra.mxu3 %v2132_v46 }
 0xfca   :  { %v1791_v1 = vmul.f32 %v2209_v29, %v1786_v51  ;;  %2012 = vmatpush.msrb.mxu0 %v1991_v35 }
 0xfcb   :  { %1884 = vmatpush.msra.mxu3 %v2131_v13 }
 0xfcc   :  { %v1796_v2 = vadd.f32 %v2210_v39, %v1791_v1  ;;  %v1990_v1 = vld [vmem:[%s3354_s17 + $0x8] sm:$0xff] }
 0xfcd   :  { %1885 = vmatpush.msra.mxu3 %v2130_v7  ;;  %2013 = vmatpush.msrb.mxu0 %v1990_v1 }
 0xfce   :  { %2123 = vmatmul.msk.f32.gmra.mxu2 %vm121_vm2, %v1796_v2 }
 0xfcf   :  { %1886 = vmatpush.msra.mxu3 %v2129_v0  ;;  %2014 = vmatpush.msrb.mxu0 %v1989_v3 }
 0xfd1   :  { %1887 = vmatpush.msra.mxu3 %v2128_v37 }
 0xfd3   :  { %1888 = vmatpush.msra.mxu3 %v2127_v8 }
 0xfd5   :  { %1889 = vmatpush.msra.mxu3 %v2126_v9 }
 0xfd7   :  { %1890 = vmatpush.msra.mxu3 %v2125_v10 }
 0xfd9   :  { %1891 = vmatpush.msra.mxu3 %v2124_v26 }
0x1039   :  { %v1830_v11 = vpop.f32.mrf.mxu2 }
0x103a   :  { %v1831_v12 = vadd.f32 %v2211_v52, %v1830_v11 }
0x103c   :  { %v1838_v47 = vmul.f32 0.044715, %v1831_v12  ;;  %v1836_v17 = vmul.f32 0.5, %v1831_v12 }
0x103e   :  { %v1840_v14 = vmul.f32 %v1838_v47, %v1831_v12 }
0x1040   :  { %v1842_v48 = vmul.f32 %v1840_v14, %v1831_v12 }
0x1042   :  { %v1844_v49 = vadd.f32 %v1842_v48, %v1831_v12 }
0x1044   :  { %v1846_v50 = vmul.f32 0.7978846, %v1844_v49 }
0x1046   :  { %2317 = vtanh.f32 %v1846_v50 }
0x104c   :  { %v2318_v15 = vpop.eup %2317 }
0x104d   :  { %v1850_v30 = vadd.f32 1.0, %v2318_v15 }
0x104f   :  { %v1852_v18 = vmul.f32 %v1850_v30, %v1836_v17 }
0x1051   :  { %1892 = vmatmul.f32.vlgmr.msra.gmra.mxu3 %v1852_v18  ;;  %v1833_v58 = vpop.f32.mrf.mxu2 }
0x1052   :  { %v1834_v45 = vadd.f32 %v2211_v52, %v1833_v58 }
0x1054   :  { %v1839_v20 = vmul.f32 0.044715, %v1834_v45  ;;  %v1837_v29 = vmul.f32 0.5, %v1834_v45 }
0x1056   :  { %v1841_v21 = vmul.f32 %v1839_v20, %v1834_v45 }
0x1058   :  { %v1843_v23 = vmul.f32 %v1841_v21, %v1834_v45  ;;  %v2214_v21 = vld [vmem:[%s3353_s16] ss:$0 sm:$0xff] }
0x105a   :  { %v1845_v24 = vadd.f32 %v1843_v23, %v1834_v45 }
0x105c   :  { %v1847_v27 = vmul.f32 0.7978846, %v1845_v24 }
0x105e   :  { %2319 = vtanh.f32 %v1847_v27 }
0x1064   :  { %v2320_v28 = vpop.eup %2319 }
0x1065   :  { %v1851_v32 = vadd.f32 1.0, %v2320_v28 }
0x1067   :  { %v1853_v33 = vmul.f32 %v1851_v32, %v1837_v29 }
0x1069   :  { %1895 = vmatmul.f32.gmra.mxu3 %v1853_v33 }
0x10d4   :  { %v1893_v44 = vpop.f32.mrf.mxu3 }
0x10d5   :  { %v1894_v36 = vadd.f32 %v2212_v34, %v1893_v44 }
0x10d7   :  { %v1899_v39 = vadd.f32 %v1894_v36, %v3202_v19 }
0x10d9   :  { %v1903_v40 = vsel %vm121_vm2, %v1899_v39, 0.0 }
0x10da   :  { %1904 = vadd.xlane.f32.xlu1 %v1903_v40 }
0x10ec   :  { %v1896_v16 = vpop.f32.mrf.mxu3 }
0x10ed   :  { %v1897_v42 = vadd.f32 %v2212_v34, %v1896_v16 }
0x10ef   :  { %v1900_v41 = vadd.f32 %v1897_v42, %v3207_v57 }
0x10f1   :  { %v1906_v43 = vsel %vm121_vm2, %v1900_v41, 0.0 }
0x10f2   :  { %1907 = vadd.xlane.f32.xlu1 %v1906_v43 }
0x114d   :  { %v1905_v6 = vpop.xlane.xlu1 %1904 }
0x114e   :  { %v1909_v61 = vmul.f32 %v1905_v6, %v2533_v38 }
0x1150   :  { %v1911_v53 = vsub.f32 %v1899_v39, %v1909_v61 }
0x1152   :  { %v1913_v54 = vmul.f32 %v1911_v53, %v1911_v53 }
0x1154   :  { %v1915_v56 = vsel %vm121_vm2, %v1913_v54, 0.0 }
0x1155   :  { %1916 = vadd.xlane.f32.xlu1 %v1915_v56 }
0x1165   :  { %v1908_v59 = vpop.xlane.xlu1 %1907 }
0x1166   :  { %v1910_v19 = vmul.f32 %v1908_v59, %v2533_v38 }
0x1168   :  { %v3305_v60 = vsub.f32 %v1900_v41, %v1910_v19 }
0x116a   :  { %v1914_v55 = vmul.f32 %v3305_v60, %v3305_v60 }
0x116c   :  { %v1918_v57 = vsel %vm121_vm2, %v1914_v55, 0.0 }
0x116d   :  { %1919 = vadd.xlane.f32.xlu1 %v1918_v57 }
0x11c8   :  { %v1917_v25 = vpop.xlane.xlu1 %1916 }
0x11c9   :  { %v1921_v31 = vmul.f32 %v1917_v25, %v2533_v38 }
0x11cb   :  { %v1923_v62 = vadd.f32 1e-05, %v1921_v31 }
0x11cd   :  { %2321 = vrsqrt.f32 %v1923_v62  ;;  %vm1932_vm15 = vcmp.eq.f32.partialorder %v1923_v62, inf  ;;  %v1935_v7 = vand.u32 2147483648, %v1923_v62  ;;  %vm1934_vm4 = vcmp.eq.f32.partialorder %v1923_v62, 0.0 }
0x11d3   :  { %v2322_v22 = vpop.eup %2321 }
0x11d4   :  { %v1926_v51 = vmul.f32 %v2322_v22, %v1923_v62 }
0x11d6   :  { %v1927_v2 = vmul.f32 %v2322_v22, %v1926_v51 }
0x11d8   :  { %v1928_v5 = vmul.f32 0.5, %v1927_v2 }
0x11da   :  { %v1929_v4 = vsub.f32 1.5, %v1928_v5 }
0x11dc   :  { %v1930_v46 = vmul.f32 %v2322_v22, %v1929_v4 }
0x11de   :  { %v1931_v13 = vmul.f32 %v1930_v46, %v1923_v62 }
0x11e0   :  { %v1933_v0 = vsel %vm1932_vm15, %v1923_v62, %v1931_v13  ;;  %v1920_v37 = vpop.xlane.xlu1 %1919 }
0x11e1   :  { %v1936_v8 = vsel %vm1934_vm4, %v1935_v7, %v1933_v0  ;;  %v1922_v9 = vmul.f32 %v1920_v37, %v2533_v38  ;;  %v2213_v38 = vld [vmem:[%s3352_s15] ss:$0 sm:$0xff]  ;;  %s2368_s15 = smov [#allocation2]  }
0x11e2   :  { %2323 = vrcp.f32 %v1936_v8  ;;  %v1960_v47 = vand.u32 2147483648, %v1936_v8  ;;  %v1958_v49 = vand.u32 2147483647, %v1936_v8  ;;  %vm1954_vm0 = vweird.f32 %v1936_v8  ;;  %s2028_s16 = sshll.u32 %s2368_s15, 4  ;;  %s2029_s16 = int_to_ptr.vmem [resolvable:$true] %s2028_s16 }
0x11e3   :  { %v1924_v10 = vadd.f32 1e-05, %v1922_v9 }
0x11e4   :  { %v1961_v17 = vor.u32 1.1754944e-38, %v1960_v47  ;;  %vm1959_vm9 = vcmp.eq.f32.partialorder %v1958_v49, 8.507059e+37 }
0x11e5   :  { %2325 = vrsqrt.f32 %v1924_v10  ;;  %vm1944_vm3 = vcmp.eq.f32.partialorder %v1924_v10, inf  ;;  %v1947_v29 = vand.u32 2147483648, %v1924_v10  ;;  %vm1946_vm6 = vcmp.eq.f32.partialorder %v1924_v10, 0.0 }
0x11e8   :  { %v2324_v26 = vpop.eup %2323 }
0x11e9   :  { %v1950_v52 = vmul.f32 %v2324_v26, %v1936_v8  ;;  %vm1955_vm5 = vweird.f32 %v2324_v26 }
0x11ea   :  { %vm1956_vm1 = vmor %vm1954_vm0, %vm1955_vm5 }
0x11eb   :  { %v1951_v11 = vsub.f32 1.0, %v1950_v52  ;;  %v2326_v12 = vpop.eup %2325 }
0x11ec   :  { %v1938_v14 = vmul.f32 %v2326_v12, %v1924_v10 }
0x11ed   :  { %v1952_v48 = vmul.f32 %v2324_v26, %v1951_v11 }
0x11ee   :  { %v1939_v50 = vmul.f32 %v2326_v12, %v1938_v14 }
0x11ef   :  { %v1953_v15 = vadd.f32 %v2324_v26, %v1952_v48 }
0x11f0   :  { %v1940_v30 = vmul.f32 0.5, %v1939_v50 }
0x11f1   :  { %v1957_v18 = vsel %vm1956_vm1, %v2324_v26, %v1953_v15 }
0x11f2   :  { %v1962_v58 = vsel %vm1959_vm9, %v1961_v17, %v1957_v18  ;;  %v1941_v45 = vsub.f32 1.5, %v1940_v30 }
0x11f3   :  { %v1963_v20 = vmul.f32 %v1962_v58, %v1911_v53 }
0x11f4   :  { %v1942_v24 = vmul.f32 %v2326_v12, %v1941_v45 }
0x11f5   :  { %v1982_v23 = vmul.f32 %v2213_v38, %v1963_v20 }
0x11f6   :  { %v1943_v28 = vmul.f32 %v1942_v24, %v1924_v10 }
0x11f7   :  { %v1987_v27 = vadd.f32 %v2214_v21, %v1982_v23 }
0x11f8   :  { %v1945_v32 = vsel %vm1944_vm3, %v1924_v10, %v1943_v28 }
0x11f9   :  { %2141 = vmatmul.msk.f32.vlgmr.msrb.gmra.mxu0 %vm121_vm2, %v1987_v27  ;;  %v1948_v33 = vsel %vm1946_vm6, %v1947_v29, %v1945_v32 }
0x11fa   :  { %2327 = vrcp.f32 %v1948_v33  ;;  %v1975_v39 = vand.u32 2147483648, %v1948_v33  ;;  %v1973_v16 = vand.u32 2147483647, %v1948_v33  ;;  %vm1969_vm8 = vweird.f32 %v1948_v33 }
0x11fc   :  { %v1976_v41 = vor.u32 1.1754944e-38, %v1975_v39  ;;  %vm1974_vm11 = vcmp.eq.f32.partialorder %v1973_v16, 8.507059e+37 }
0x1200   :  { %v2328_v34 = vpop.eup %2327 }
0x1201   :  { %v1965_v44 = vmul.f32 %v2328_v34, %v1948_v33  ;;  %vm1970_vm7 = vweird.f32 %v2328_v34 }
0x1202   :  { %vm1971_vm10 = vmor %vm1969_vm8, %vm1970_vm7 }
0x1203   :  { %v1966_v36 = vsub.f32 1.0, %v1965_v44 }
0x1205   :  { %v1967_v40 = vmul.f32 %v2328_v34, %v1966_v36 }
0x1207   :  { %v1968_v42 = vadd.f32 %v2328_v34, %v1967_v40 }
0x1209   :  { %v1972_v43 = vsel %vm1971_vm10, %v2328_v34, %v1968_v42 }
0x120a   :  { %v1977_v6 = vsel %vm1974_vm11, %v1976_v41, %v1972_v43 }
0x120b   :  { %v1978_v61 = vmul.f32 %v1977_v6, %v3305_v60 }
0x120d   :  { %v1983_v53 = vmul.f32 %v2213_v38, %v1978_v61 }
0x120f   :  { %v1988_v54 = vadd.f32 %v2214_v21, %v1983_v53 }
0x1211   :  { %2142 = vmatmul.msk.f32.gmra.mxu0 %vm121_vm2, %v1988_v54 }
0x1276   :  { %v2016_v56 = vpop.f32.mrf.mxu0 }
0x1277   :  { %2022 = vst [vmem:[#allocation2] sm:$0xff] %v2016_v56 }
0x128e   :  { %v2019_v59 = vpop.f32.mrf.mxu0 }
0x128f   :  { %2023 = vst [vmem:[#allocation2 + $0x8] sm:$0xff] %v2019_v59 }
0x1290   :  { %2036 = dma.vmem_to_hbm [thread:$0]  %s2029_s16, 256, %s2031_s27, [#allocation3], %s2369_s26, %s2369_s26, %s3382_s3  }
0x1291   :  { %2355 = dma.done.wait [#allocation3], 256  }
0x1292   :  { %2356 = vsyncadd [#allocation3], 4294967040 }
0x1293   :  { %2041 = vsyncpa [#allocation3], 1 }

</bundles_post_ra>
